<compile_context>
chip_gen: v7x
topology: tpu7x:2x2x1
jax: 0.10.0
libtpu: 0.0.40
codegen_flags: <defaults>
</compile_context>

<pallas_src>
import functools

import jax
import jax.numpy as jnp
from jax import lax
from jax.experimental import pallas as pl
from jax.experimental.pallas import tpu as pltpu


_CHUNK = 64        # source rows per inner-loop step (dist chunk = 64 x 128)
_MT_MAX = 1024     # target columns per grid step (d2 carry = mt/128 vregs)
_BIG = 1e30        # sentinel squared distance for padded points


def _round_up(x, m):
    return ((x + m - 1) // m) * m


def _chamfer_kernel(p1_ref, p2_ref, out_ref, d1_ref, d2sum_ref, *,
                    chunk, n_groups, mt, m_real, n_real, n_pad, mask_cols,
                    precision):
    """One grid step: one batch element x one tile of mt target columns.

    p1_ref    : (N_pad, K8)   augmented source points  [-2x, |x|^2, 1, 0...]
    p2_ref    : (K8, mt)      augmented target points  [y, 1, |y|^2, 0...]^T
    out_ref   : (8, 128)      per-batch total, written on the last m tile
    d1_ref    : (N_pad, 128)  lane-dense running min over targets (VMEM)
    d2sum_ref : (1, 128)      lane-dense running sum of d2 (VMEM)
    """
    t = pl.program_id(1)
    nt = pl.num_programs(1)

    @pl.when(t == 0)
    def _init():
        d1_ref[...] = jnp.full(d1_ref.shape, jnp.inf, dtype=jnp.float32)
        d2sum_ref[...] = jnp.zeros(d2sum_ref.shape, dtype=jnp.float32)

    n_chunks = n_pad // chunk
    sub_groups = chunk // 8

    def chunk_body(c, d2run):
        off = pl.multiple_of(c * chunk, chunk)
        p1c = p1_ref[pl.ds(off, chunk), :]                  # (chunk, K8)
        d1c = d1_ref[pl.ds(off, chunk), :]                  # (chunk, 128)
        new_d2 = []
        for g in range(n_groups):
            p2g = p2_ref[:, g * 128:(g + 1) * 128]          # (K8, 128)
            # dist[n, m] = -2 x_n . y_m + |x_n|^2 + |y_m|^2 ; norms are folded
            # into the MXU contraction via the augmented lanes.
            dist = lax.dot_general(                         # (chunk, 128)
                p1c, p2g,
                dimension_numbers=(((1,), (0,)), ((), ())),
                preferred_element_type=jnp.float32,
                precision=precision)
            # d1: running nearest-target min, lane-dense (VPU only).
            d1c = jnp.minimum(d1c, dist)
            # d2: reduce the chunk rows down to 8 sublanes (VPU only); the
            # final 8->1 sublane min is done once per tile after the loop.
            cmin = dist[0:8, :]
            for s in range(1, sub_groups):
                cmin = jnp.minimum(cmin, dist[s * 8:(s + 1) * 8, :])
            new_d2.append(jnp.minimum(d2run[g], cmin))
        d1_ref[pl.ds(off, chunk), :] = d1c
        return tuple(new_d2)

    d2_init = tuple(jnp.full((8, 128), jnp.inf, dtype=jnp.float32)
                    for _ in range(n_groups))
    d2run = lax.fori_loop(0, n_chunks, chunk_body, d2_init)

    # Per-tile d2 contribution: 8->1 sublane min (XLU, once per tile), mask the
    # sentinel columns (only the last tile has any) and accumulate lane-dense.
    if mask_cols:
        lane = lax.broadcasted_iota(jnp.int32, (1, 128), 1)
    acc = jnp.zeros((1, 128), dtype=jnp.float32)
    for g in range(n_groups):
        dcol = jnp.min(d2run[g], axis=0, keepdims=True)     # (1, 128)
        if mask_cols:
            col = t * mt + g * 128 + lane
            dcol = jnp.where(col < m_real, dcol, 0.0)
        acc = acc + dcol
    d2sum_ref[...] = d2sum_ref[...] + acc

    @pl.when(t == nt - 1)
    def _finalize():
        d1min = jnp.min(d1_ref[...], axis=1, keepdims=True)  # (N_pad, 1)
        if n_pad > n_real:
            rows = lax.broadcasted_iota(jnp.int32, (n_pad, 1), 0)
            d1min = jnp.where(rows < n_real, d1min, 0.0)
        total = jnp.sum(d1min) + jnp.sum(d2sum_ref[...])
        out_ref[...] = jnp.full(out_ref.shape, total, dtype=jnp.float32)


def _chamfer_impl(in_pc: jax.Array, target_pc: jax.Array, precision) -> jax.Array:
    assert in_pc.ndim == 3 and target_pc.ndim == 3
    B, C, N = in_pc.shape
    Bt, Ct, M = target_pc.shape
    assert B == Bt and C == Ct
    assert N == M, "the reference's (B,N)+(B,M) broadcast requires N == M"

    k_aug = C + 2
    K8 = _round_up(k_aug, 8)

    # (B, C, N) -> (B, N, C); build augmented points (tiny XLA ops).
    pc1 = jnp.transpose(in_pc, (0, 2, 1)).astype(jnp.float32)       # (B, N, C)
    pc2 = jnp.transpose(target_pc, (0, 2, 1)).astype(jnp.float32)   # (B, M, C)
    s1 = jnp.sum(pc1 * pc1, axis=-1, keepdims=True)
    s2 = jnp.sum(pc2 * pc2, axis=-1, keepdims=True)
    p1 = jnp.concatenate([-2.0 * pc1, s1, jnp.ones_like(s1)], axis=-1)
    p2 = jnp.concatenate([pc2, jnp.ones_like(s2), s2], axis=-1)
    p1 = jnp.pad(p1, ((0, 0), (0, 0), (0, K8 - k_aug)))             # (B, N, K8)
    p2 = jnp.pad(p2, ((0, 0), (0, 0), (0, K8 - k_aug)))             # (B, M, K8)

    # Pad N with sentinel rows (|x|^2 slot = BIG -> distance ~BIG to every real
    # target; their d1 contribution is masked out in the kernel epilogue).
    n_pad = _round_up(N, 128)
    if n_pad > N:
        pad_rows = jnp.zeros((B, n_pad - N, K8), jnp.float32).at[:, :, C].set(_BIG)
        p1 = jnp.concatenate([p1, pad_rows], axis=1)

    # Target tile size; pad M with sentinel columns (|y|^2 slot = BIG -> never
    # win the d1 min; masked out of the d2 sum inside the kernel).
    mt = min(_MT_MAX, _round_up(M, 128))
    m_pad = _round_up(M, mt)
    if m_pad > M:
        sent = jnp.zeros((B, m_pad - M, K8), jnp.float32).at[:, :, C + 1].set(_BIG)
        p2 = jnp.concatenate([p2, sent], axis=1)
    p2t = jnp.transpose(p2, (0, 2, 1))                              # (B, K8, M_pad)

    grid = (B, m_pad // mt)
    kernel = functools.partial(
        _chamfer_kernel, chunk=_CHUNK, n_groups=mt // 128, mt=mt,
        m_real=M, n_real=N, n_pad=n_pad, mask_cols=m_pad > M,
        precision=precision)

    # VMEM footprint (the (N_pad, K8) p1 block pads its minor dim to 128 lanes)
    # and a generation-aware limit (v7x: 64 MiB/TC, v5e/v6e: 128 MiB).
    est = (2 * n_pad * _round_up(K8, 128) * 4   # double-buffered p1 block
           + 2 * K8 * mt * 4                    # double-buffered p2 block
           + n_pad * 128 * 4                    # d1 running-min scratch
           + (2 << 20))                         # outputs / internal scratch slack
    try:
        cap = int(pltpu.get_tpu_info().vmem_capacity_bytes)
    except Exception:
        cap = 64 * 1024 * 1024
    vmem_limit = int(min(max(32 * 1024 * 1024, est), 0.75 * cap))

    partial_sums = pl.pallas_call(
        kernel,
        out_shape=jax.ShapeDtypeStruct((B, 8, 128), jnp.float32),
        grid_spec=pltpu.PrefetchScalarGridSpec(
            num_scalar_prefetch=0,
            grid=grid,
            in_specs=[
                pl.BlockSpec((None, n_pad, K8), lambda b, t: (b, 0, 0)),
                pl.BlockSpec((None, K8, mt), lambda b, t: (b, 0, t)),
            ],
            out_specs=pl.BlockSpec((None, 8, 128), lambda b, t: (b, 0, 0)),
            scratch_shapes=[
                pltpu.VMEM((n_pad, 128), jnp.float32),   # lane-dense d1 min
                pltpu.VMEM((1, 128), jnp.float32),       # lane-dense d2 sum
            ],
        ),
        compiler_params=pltpu.CompilerParams(
            dimension_semantics=("parallel", "arbitrary"),
            vmem_limit_bytes=vmem_limit,
        ),
    )(p1, p2t)

    total = jnp.sum(partial_sums[:, 0, 0])
    # mean over B batches of [ (sum(d1) + sum(d2)) / (2 N) ]
    return total / jnp.float32(2 * N * B)


def chamfer_loss(in_pc: jax.Array, target_pc: jax.Array) -> jax.Array:
    """Chamfer loss matching PyTorch ChamferLoss.forward; inputs (B, C, N)."""
    try:
        # MXU has huge slack at K8 = 8: full-f32 passes are free and keep the
        # folded |x|^2 / |y|^2 terms (and the cross term) exact.
        return _chamfer_impl(in_pc, target_pc, lax.Precision.HIGHEST)
    except Exception:
        # Fallback for lowerings without matmul-precision support.
        return _chamfer_impl(in_pc, target_pc, None)


def _chamfer_ref(in_pc, target_pc):
    # Pure-JAX mirror of the torch code (sanity check).
    pc1 = jnp.transpose(in_pc, (0, 2, 1))
    pc2 = jnp.transpose(target_pc, (0, 2, 1))
    cross = jnp.einsum("bnc,bmc->bnm", pc1, pc2, precision="highest")
    dist = (-2.0 * cross
            + jnp.sum(pc1 ** 2, -1)[:, :, None]
            + jnp.sum(pc2 ** 2, -1)[:, None, :])
    d1 = jnp.min(dist, axis=-1)
    d2 = jnp.min(dist, axis=1)
    return jnp.mean((d1 + d2) / 2.0)


if __name__ == "__main__":
    key = jax.random.PRNGKey(0)
    k1, k2, k3, k4, k5, k6 = jax.random.split(key, 6)

    # Small base case: 2 clouds of 128 3-D points (module layout (B, C, N)).
    a1 = jax.random.normal(k1, (2, 3, 128), dtype=jnp.float32)
    b1 = jax.random.normal(k2, (2, 3, 128), dtype=jnp.float32)
    out1 = jax.block_until_ready(chamfer_loss(a1, b1))
    ref1 = jax.block_until_ready(_chamfer_ref(a1, b1))
    assert jnp.allclose(out1, ref1, rtol=5e-3, atol=1e-5), (out1, ref1)

    # Non-multiple-of-128 point count: exercises sentinel row/column padding.
    a2 = jax.random.normal(k3, (2, 3, 200), dtype=jnp.float32)
    b2 = jax.random.normal(k4, (2, 3, 200), dtype=jnp.float32)
    out2 = jax.block_until_ready(chamfer_loss(a2, b2))
    ref2 = jax.block_until_ready(_chamfer_ref(a2, b2))
    assert jnp.allclose(out2, ref2, rtol=5e-3, atol=1e-5), (out2, ref2)

    # Multi-tile M (mt = 1024 -> 2 tiles), padded last tile, many N chunks.
    a3 = jax.random.normal(k5, (2, 3, 1536), dtype=jnp.float32)
    b3 = jax.random.normal(k6, (2, 3, 1536), dtype=jnp.float32)
    out3 = jax.block_until_ready(chamfer_loss(a3, b3))
    ref3 = jax.block_until_ready(_chamfer_ref(a3, b3))
    assert jnp.allclose(out3, ref3, rtol=5e-3, atol=1e-5), (out3, ref3)

    print("KERNEL_OK")
</pallas_src>

<mosaic_0001>
module attributes {stable_mosaic.version = 11 : i64} {
  func.func @_chamfer_kernel(%arg0: i32, %arg1: i32, %arg2: memref<1x128x8xf32, #tpu.memory_space<vmem>>, %arg3: memref<1x8x128xf32, #tpu.memory_space<vmem>>, %arg4: memref<1x8x128xf32, #tpu.memory_space<vmem>>, %arg5: memref<128x128xf32, #tpu.memory_space<vmem>>, %arg6: memref<1x128xf32, #tpu.memory_space<vmem>>) attributes {dimension_semantics = [#tpu.dimension_semantics<parallel>, #tpu.dimension_semantics<arbitrary>], iteration_bounds = array<i64: 2, 1>, scalar_prefetch = 0 : i64, scratch_operands = 2 : i64, tpu.core_type = #tpu.core_type<tc>, window_params = [{transform_indices = @transform_0, window_bounds = array<i64: 1, 128, 8>}, {transform_indices = @transform_1, window_bounds = array<i64: 1, 8, 128>}, {transform_indices = @transform_2, window_bounds = array<i64: 1, 8, 128>}]} {
    %c0_i32 = arith.constant 0 : i32
    %0 = arith.cmpi eq, %arg1, %c0_i32 : i32
    %1 = arith.extui %0 : i1 to i32
    %c0_i32_0 = arith.constant 0 : i32
    %2 = arith.cmpi ne, %1, %c0_i32_0 : i32
    scf.if %2 {
      %cst_10 = arith.constant 0x7F800000 : f32
      %16 = vector.broadcast %cst_10 : f32 to vector<128x128xf32>
      %c0_11 = arith.constant 0 : index
      %c0_12 = arith.constant 0 : index
      %17 = vector.load %arg5[%c0_11, %c0_12] : memref<128x128xf32, #tpu.memory_space<vmem>>, vector<128x128xf32>
      tpu.vector_store %arg5[%c0_11, %c0_12], %16 {strides = array<i32>} : memref<128x128xf32, #tpu.memory_space<vmem>>, vector<128x128xf32>,
      %cst_13 = arith.constant 0.000000e+00 : f32
      %18 = vector.broadcast %cst_13 : f32 to vector<1x128xf32>
      %c0_14 = arith.constant 0 : index
      %c0_15 = arith.constant 0 : index
      %19 = vector.load %arg6[%c0_14, %c0_15] : memref<1x128xf32, #tpu.memory_space<vmem>>, vector<1x128xf32>
      tpu.vector_store %arg6[%c0_14, %c0_15], %18 {strides = array<i32>} : memref<1x128xf32, #tpu.memory_space<vmem>>, vector<1x128xf32>,
    } else {
    }
    %cst = arith.constant 0x7F800000 : f32
    %3 = vector.broadcast %cst : f32 to vector<8x128xf32>
    %c0_i32_1 = arith.constant 0 : i32
    %c2_i32 = arith.constant 2 : i32
    %4 = arith.addi %c0_i32_1, %c2_i32 : i32
    %c1_i32 = arith.constant 1 : i32
    %5 = scf.for %arg7 = %c0_i32_1 to %4 step %c1_i32 iter_args(%arg8 = %3) -> (vector<8x128xf32>)  : i32 {
      %c64_i32 = arith.constant 64 : i32
      %16 = arith.muli %arg7, %c64_i32 : i32
      %17 = tpu.assume_multiple %16, 64 : i32
      %c0_10 = arith.constant 0 : index
      %18 = arith.index_cast %17 : i32 to index
      %c0_11 = arith.constant 0 : index
      %19 = vector.load %arg2[%c0_10, %18, %c0_11] : memref<1x128x8xf32, #tpu.memory_space<vmem>>, vector<1x64x8xf32>
      %20 = vector.shape_cast %19 : vector<1x64x8xf32> to vector<64x8xf32>
      %21 = arith.index_cast %17 : i32 to index
      %c0_12 = arith.constant 0 : index
      %22 = vector.load %arg5[%21, %c0_12] : memref<128x128xf32, #tpu.memory_space<vmem>>, vector<64x128xf32>
      %c0_13 = arith.constant 0 : index
      %c0_14 = arith.constant 0 : index
      %c0_15 = arith.constant 0 : index
      %23 = vector.load %arg3[%c0_13, %c0_14, %c0_15] : memref<1x8x128xf32, #tpu.memory_space<vmem>>, vector<1x8x128xf32>
      %24 = vector.shape_cast %23 : vector<1x8x128xf32> to vector<8x128xf32>
      %cst_16 = arith.constant dense<0.000000e+00> : vector<64x128xf32>
      %25 = tpu.matmul %20, %24, %cst_16 {dimension_numbers = #tpu.dot_dimension_numbers<[1], [0], [0], [1], [0, 0, 1, 1], [], []>, precision = #tpu.contract_precision<fp32>} : vector<64x8xf32>, vector<8x128xf32>, vector<64x128xf32> -> vector<64x128xf32>
      %26 = arith.minimumf %22, %25 : vector<64x128xf32>
      %27 = vector.extract_strided_slice %25 {offsets = [0, 0], sizes = [8, 128], strides = [1, 1]} : vector<64x128xf32> to vector<8x128xf32>
      %28 = vector.extract_strided_slice %25 {offsets = [8, 0], sizes = [8, 128], strides = [1, 1]} : vector<64x128xf32> to vector<8x128xf32>
      %29 = arith.minimumf %27, %28 : vector<8x128xf32>
      %30 = vector.extract_strided_slice %25 {offsets = [16, 0], sizes = [8, 128], strides = [1, 1]} : vector<64x128xf32> to vector<8x128xf32>
      %31 = arith.minimumf %29, %30 : vector<8x128xf32>
      %32 = vector.extract_strided_slice %25 {offsets = [24, 0], sizes = [8, 128], strides = [1, 1]} : vector<64x128xf32> to vector<8x128xf32>
      %33 = arith.minimumf %31, %32 : vector<8x128xf32>
      %34 = vector.extract_strided_slice %25 {offsets = [32, 0], sizes = [8, 128], strides = [1, 1]} : vector<64x128xf32> to vector<8x128xf32>
      %35 = arith.minimumf %33, %34 : vector<8x128xf32>
      %36 = vector.extract_strided_slice %25 {offsets = [40, 0], sizes = [8, 128], strides = [1, 1]} : vector<64x128xf32> to vector<8x128xf32>
      %37 = arith.minimumf %35, %36 : vector<8x128xf32>
      %38 = vector.extract_strided_slice %25 {offsets = [48, 0], sizes = [8, 128], strides = [1, 1]} : vector<64x128xf32> to vector<8x128xf32>
      %39 = arith.minimumf %37, %38 : vector<8x128xf32>
      %40 = vector.extract_strided_slice %25 {offsets = [56, 0], sizes = [8, 128], strides = [1, 1]} : vector<64x128xf32> to vector<8x128xf32>
      %41 = arith.minimumf %39, %40 : vector<8x128xf32>
      %42 = arith.minimumf %arg8, %41 : vector<8x128xf32>
      %43 = arith.index_cast %17 : i32 to index
      %c0_17 = arith.constant 0 : index
      %44 = vector.load %arg5[%43, %c0_17] : memref<128x128xf32, #tpu.memory_space<vmem>>, vector<64x128xf32>
      tpu.vector_store %arg5[%43, %c0_17], %26 {strides = array<i32>} : memref<128x128xf32, #tpu.memory_space<vmem>>, vector<64x128xf32>,
      scf.yield %42 : vector<8x128xf32>
    }
    %c2_i32_2 = arith.constant 2 : i32
    %cst_3 = arith.constant 0.000000e+00 : f32
    %6 = vector.broadcast %cst_3 : f32 to vector<1x128xf32>
    %cst_4 = arith.constant dense<0x7F800000> : vector<128xf32>
    %7 = vector.multi_reduction <minimumf>, %5, %cst_4 [0] : vector<8x128xf32> to vector<128xf32>
    %8 = vector.shape_cast %7 : vector<128xf32> to vector<1x128xf32>
    %9 = arith.addf %6, %8 : vector<1x128xf32>
    %c0 = arith.constant 0 : index
    %c0_5 = arith.constant 0 : index
    %10 = vector.load %arg6[%c0, %c0_5] : memref<1x128xf32, #tpu.memory_space<vmem>>, vector<1x128xf32>
    %11 = arith.addf %10, %9 : vector<1x128xf32>
    %c0_6 = arith.constant 0 : index
    %c0_7 = arith.constant 0 : index
    %12 = vector.load %arg6[%c0_6, %c0_7] : memref<1x128xf32, #tpu.memory_space<vmem>>, vector<1x128xf32>
    tpu.vector_store %arg6[%c0_6, %c0_7], %11 {strides = array<i32>} : memref<1x128xf32, #tpu.memory_space<vmem>>, vector<1x128xf32>,
    %c0_i32_8 = arith.constant 0 : i32
    %13 = arith.cmpi eq, %arg1, %c0_i32_8 : i32
    %14 = arith.extui %13 : i1 to i32
    %c0_i32_9 = arith.constant 0 : i32
    %15 = arith.cmpi ne, %14, %c0_i32_9 : i32
    scf.if %15 {
      %c0_10 = arith.constant 0 : index
      %c0_11 = arith.constant 0 : index
      %16 = vector.load %arg5[%c0_10, %c0_11] : memref<128x128xf32, #tpu.memory_space<vmem>>, vector<128x128xf32>
      %cst_12 = arith.constant dense<0x7F800000> : vector<128xf32>
      %17 = vector.multi_reduction <minimumf>, %16, %cst_12 [1] : vector<128x128xf32> to vector<128xf32>
      %18 = vector.shape_cast %17 : vector<128xf32> to vector<128x1xf32>
      %19 = vector.shape_cast %18 : vector<128x1xf32> to vector<1x128x1xf32>
      %cst_13 = arith.constant dense<0.000000e+00> : vector<1xf32>
      %20 = vector.multi_reduction <add>, %19, %cst_13 [1, 2] : vector<1x128x1xf32> to vector<1xf32>
      %21 = vector.shape_cast %20 : vector<1xf32> to vector<1x1x1xf32>
      %22 = vector.extract %21[0, 0, 0] : f32 from vector<1x1x1xf32>
      %c0_14 = arith.constant 0 : index
      %c0_15 = arith.constant 0 : index
      %23 = vector.load %arg6[%c0_14, %c0_15] : memref<1x128xf32, #tpu.memory_space<vmem>>, vector<1x128xf32>
      %24 = vector.shape_cast %23 : vector<1x128xf32> to vector<1x1x128xf32>
      %cst_16 = arith.constant dense<0.000000e+00> : vector<1xf32>
      %25 = vector.multi_reduction <add>, %24, %cst_16 [1, 2] : vector<1x1x128xf32> to vector<1xf32>
      %26 = vector.shape_cast %25 : vector<1xf32> to vector<1x1x1xf32>
      %27 = vector.extract %26[0, 0, 0] : f32 from vector<1x1x1xf32>
      %28 = arith.addf %22, %27 : f32
      %29 = vector.broadcast %28 : f32 to vector<8x128xf32>
      %c0_17 = arith.constant 0 : index
      %c0_18 = arith.constant 0 : index
      %c0_19 = arith.constant 0 : index
      %30 = vector.load %arg4[%c0_17, %c0_18, %c0_19] : memref<1x8x128xf32, #tpu.memory_space<vmem>>, vector<1x8x128xf32>
      %31 = vector.shape_cast %30 : vector<1x8x128xf32> to vector<8x128xf32>
      %32 = vector.shape_cast %29 : vector<8x128xf32> to vector<1x8x128xf32>
      tpu.vector_store %arg4[%c0_17, %c0_18, %c0_19], %32 {strides = array<i32>} : memref<1x8x128xf32, #tpu.memory_space<vmem>>, vector<1x8x128xf32>,
    } else {
    }
    return
  }
  func.func @transform_0(%arg0: i32, %arg1: i32) -> (i32, i32, i32) {
    %c0_i32 = arith.constant 0 : i32
    %c0_i32_0 = arith.constant 0 : i32
    %c0_i32_1 = arith.constant 0 : i32
    return %arg0, %c0_i32, %c0_i32_0 : i32, i32, i32
  }
  func.func @transform_1(%arg0: i32, %arg1: i32) -> (i32, i32, i32) {
    %c0_i32 = arith.constant 0 : i32
    %c0_i32_0 = arith.constant 0 : i32
    return %arg0, %c0_i32, %arg1 : i32, i32, i32
  }
  func.func @transform_2(%arg0: i32, %arg1: i32) -> (i32, i32, i32) {
    %c0_i32 = arith.constant 0 : i32
    %c0_i32_0 = arith.constant 0 : i32
    %c0_i32_1 = arith.constant 0 : i32
    return %arg0, %c0_i32, %c0_i32_0 : i32, i32, i32
  }
}

module attributes {stable_mosaic.version = 11 : i64} {
  func.func @_chamfer_kernel(%arg0: i32, %arg1: i32, %arg2: memref<1x128x8xf32, #tpu.memory_space<vmem>>, %arg3: memref<1x8x128xf32, #tpu.memory_space<vmem>>, %arg4: memref<1x8x128xf32, #tpu.memory_space<vmem>>, %arg5: memref<128x128xf32, #tpu.memory_space<vmem>>, %arg6: memref<1x128xf32, #tpu.memory_space<vmem>>) attributes {dimension_semantics = [#tpu.dimension_semantics<parallel>, #tpu.dimension_semantics<arbitrary>], iteration_bounds = array<i64: 2, 1>, scalar_prefetch = 0 : i64, scratch_operands = 2 : i64, tpu.core_type = #tpu.core_type<tc>, window_params = [{transform_indices = @transform_0, window_bounds = array<i64: 1, 128, 8>}, {transform_indices = @transform_1, window_bounds = array<i64: 1, 8, 128>}, {transform_indices = @transform_2, window_bounds = array<i64: 1, 8, 128>}]} {
    %c0_i32 = arith.constant 0 : i32
    %0 = arith.cmpi eq, %arg1, %c0_i32 : i32
    %1 = arith.extui %0 : i1 to i32
    %c0_i32_0 = arith.constant 0 : i32
    %2 = arith.cmpi ne, %1, %c0_i32_0 : i32
    scf.if %2 {
      %cst_10 = arith.constant 0x7F800000 : f32
      %16 = vector.broadcast %cst_10 : f32 to vector<128x128xf32>
      %c0_11 = arith.constant 0 : index
      %c0_12 = arith.constant 0 : index
      %17 = vector.load %arg5[%c0_11, %c0_12] : memref<128x128xf32, #tpu.memory_space<vmem>>, vector<128x128xf32>
      tpu.vector_store %arg5[%c0_11, %c0_12], %16 {strides = array<i32>} : memref<128x128xf32, #tpu.memory_space<vmem>>, vector<128x128xf32>,
      %cst_13 = arith.constant 0.000000e+00 : f32
      %18 = vector.broadcast %cst_13 : f32 to vector<1x128xf32>
      %c0_14 = arith.constant 0 : index
      %c0_15 = arith.constant 0 : index
      %19 = vector.load %arg6[%c0_14, %c0_15] : memref<1x128xf32, #tpu.memory_space<vmem>>, vector<1x128xf32>
      tpu.vector_store %arg6[%c0_14, %c0_15], %18 {strides = array<i32>} : memref<1x128xf32, #tpu.memory_space<vmem>>, vector<1x128xf32>,
    } else {
    }
    %cst = arith.constant 0x7F800000 : f32
    %3 = vector.broadcast %cst : f32 to vector<8x128xf32>
    %c0_i32_1 = arith.constant 0 : i32
    %c2_i32 = arith.constant 2 : i32
    %4 = arith.addi %c0_i32_1, %c2_i32 : i32
    %c1_i32 = arith.constant 1 : i32
    %5 = scf.for %arg7 = %c0_i32_1 to %4 step %c1_i32 iter_args(%arg8 = %3) -> (vector<8x128xf32>)  : i32 {
      %c64_i32 = arith.constant 64 : i32
      %16 = arith.muli %arg7, %c64_i32 : i32
      %17 = tpu.assume_multiple %16, 64 : i32
      %c0_10 = arith.constant 0 : index
      %18 = arith.index_cast %17 : i32 to index
      %c0_11 = arith.constant 0 : index
      %19 = vector.load %arg2[%c0_10, %18, %c0_11] : memref<1x128x8xf32, #tpu.memory_space<vmem>>, vector<1x64x8xf32>
      %20 = vector.shape_cast %19 : vector<1x64x8xf32> to vector<64x8xf32>
      %21 = arith.index_cast %17 : i32 to index
      %c0_12 = arith.constant 0 : index
      %22 = vector.load %arg5[%21, %c0_12] : memref<128x128xf32, #tpu.memory_space<vmem>>, vector<64x128xf32>
      %c0_13 = arith.constant 0 : index
      %c0_14 = arith.constant 0 : index
      %c0_15 = arith.constant 0 : index
      %23 = vector.load %arg3[%c0_13, %c0_14, %c0_15] : memref<1x8x128xf32, #tpu.memory_space<vmem>>, vector<1x8x128xf32>
      %24 = vector.shape_cast %23 : vector<1x8x128xf32> to vector<8x128xf32>
      %cst_16 = arith.constant dense<0.000000e+00> : vector<64x128xf32>
      %25 = tpu.matmul %20, %24, %cst_16 {dimension_numbers = #tpu.dot_dimension_numbers<[1], [0], [0], [1], [0, 0, 1, 1], [], []>} : vector<64x8xf32>, vector<8x128xf32>, vector<64x128xf32> -> vector<64x128xf32>
      %26 = arith.minimumf %22, %25 : vector<64x128xf32>
      %27 = vector.extract_strided_slice %25 {offsets = [0, 0], sizes = [8, 128], strides = [1, 1]} : vector<64x128xf32> to vector<8x128xf32>
      %28 = vector.extract_strided_slice %25 {offsets = [8, 0], sizes = [8, 128], strides = [1, 1]} : vector<64x128xf32> to vector<8x128xf32>
      %29 = arith.minimumf %27, %28 : vector<8x128xf32>
      %30 = vector.extract_strided_slice %25 {offsets = [16, 0], sizes = [8, 128], strides = [1, 1]} : vector<64x128xf32> to vector<8x128xf32>
      %31 = arith.minimumf %29, %30 : vector<8x128xf32>
      %32 = vector.extract_strided_slice %25 {offsets = [24, 0], sizes = [8, 128], strides = [1, 1]} : vector<64x128xf32> to vector<8x128xf32>
      %33 = arith.minimumf %31, %32 : vector<8x128xf32>
      %34 = vector.extract_strided_slice %25 {offsets = [32, 0], sizes = [8, 128], strides = [1, 1]} : vector<64x128xf32> to vector<8x128xf32>
      %35 = arith.minimumf %33, %34 : vector<8x128xf32>
      %36 = vector.extract_strided_slice %25 {offsets = [40, 0], sizes = [8, 128], strides = [1, 1]} : vector<64x128xf32> to vector<8x128xf32>
      %37 = arith.minimumf %35, %36 : vector<8x128xf32>
      %38 = vector.extract_strided_slice %25 {offsets = [48, 0], sizes = [8, 128], strides = [1, 1]} : vector<64x128xf32> to vector<8x128xf32>
      %39 = arith.minimumf %37, %38 : vector<8x128xf32>
      %40 = vector.extract_strided_slice %25 {offsets = [56, 0], sizes = [8, 128], strides = [1, 1]} : vector<64x128xf32> to vector<8x128xf32>
      %41 = arith.minimumf %39, %40 : vector<8x128xf32>
      %42 = arith.minimumf %arg8, %41 : vector<8x128xf32>
      %43 = arith.index_cast %17 : i32 to index
      %c0_17 = arith.constant 0 : index
      %44 = vector.load %arg5[%43, %c0_17] : memref<128x128xf32, #tpu.memory_space<vmem>>, vector<64x128xf32>
      tpu.vector_store %arg5[%43, %c0_17], %26 {strides = array<i32>} : memref<128x128xf32, #tpu.memory_space<vmem>>, vector<64x128xf32>,
      scf.yield %42 : vector<8x128xf32>
    }
    %c2_i32_2 = arith.constant 2 : i32
    %cst_3 = arith.constant 0.000000e+00 : f32
    %6 = vector.broadcast %cst_3 : f32 to vector<1x128xf32>
    %cst_4 = arith.constant dense<0x7F800000> : vector<128xf32>
    %7 = vector.multi_reduction <minimumf>, %5, %cst_4 [0] : vector<8x128xf32> to vector<128xf32>
    %8 = vector.shape_cast %7 : vector<128xf32> to vector<1x128xf32>
    %9 = arith.addf %6, %8 : vector<1x128xf32>
    %c0 = arith.constant 0 : index
    %c0_5 = arith.constant 0 : index
    %10 = vector.load %arg6[%c0, %c0_5] : memref<1x128xf32, #tpu.memory_space<vmem>>, vector<1x128xf32>
    %11 = arith.addf %10, %9 : vector<1x128xf32>
    %c0_6 = arith.constant 0 : index
    %c0_7 = arith.constant 0 : index
    %12 = vector.load %arg6[%c0_6, %c0_7] : memref<1x128xf32, #tpu.memory_space<vmem>>, vector<1x128xf32>
    tpu.vector_store %arg6[%c0_6, %c0_7], %11 {strides = array<i32>} : memref<1x128xf32, #tpu.memory_space<vmem>>, vector<1x128xf32>,
    %c0_i32_8 = arith.constant 0 : i32
    %13 = arith.cmpi eq, %arg1, %c0_i32_8 : i32
    %14 = arith.extui %13 : i1 to i32
    %c0_i32_9 = arith.constant 0 : i32
    %15 = arith.cmpi ne, %14, %c0_i32_9 : i32
    scf.if %15 {
      %c0_10 = arith.constant 0 : index
      %c0_11 = arith.constant 0 : index
      %16 = vector.load %arg5[%c0_10, %c0_11] : memref<128x128xf32, #tpu.memory_space<vmem>>, vector<128x128xf32>
      %cst_12 = arith.constant dense<0x7F800000> : vector<128xf32>
      %17 = vector.multi_reduction <minimumf>, %16, %cst_12 [1] : vector<128x128xf32> to vector<128xf32>
      %18 = vector.shape_cast %17 : vector<128xf32> to vector<128x1xf32>
      %19 = vector.shape_cast %18 : vector<128x1xf32> to vector<1x128x1xf32>
      %cst_13 = arith.constant dense<0.000000e+00> : vector<1xf32>
      %20 = vector.multi_reduction <add>, %19, %cst_13 [1, 2] : vector<1x128x1xf32> to vector<1xf32>
      %21 = vector.shape_cast %20 : vector<1xf32> to vector<1x1x1xf32>
      %22 = vector.extract %21[0, 0, 0] : f32 from vector<1x1x1xf32>
      %c0_14 = arith.constant 0 : index
      %c0_15 = arith.constant 0 : index
      %23 = vector.load %arg6[%c0_14, %c0_15] : memref<1x128xf32, #tpu.memory_space<vmem>>, vector<1x128xf32>
      %24 = vector.shape_cast %23 : vector<1x128xf32> to vector<1x1x128xf32>
      %cst_16 = arith.constant dense<0.000000e+00> : vector<1xf32>
      %25 = vector.multi_reduction <add>, %24, %cst_16 [1, 2] : vector<1x1x128xf32> to vector<1xf32>
      %26 = vector.shape_cast %25 : vector<1xf32> to vector<1x1x1xf32>
      %27 = vector.extract %26[0, 0, 0] : f32 from vector<1x1x1xf32>
      %28 = arith.addf %22, %27 : f32
      %29 = vector.broadcast %28 : f32 to vector<8x128xf32>
      %c0_17 = arith.constant 0 : index
      %c0_18 = arith.constant 0 : index
      %c0_19 = arith.constant 0 : index
      %30 = vector.load %arg4[%c0_17, %c0_18, %c0_19] : memref<1x8x128xf32, #tpu.memory_space<vmem>>, vector<1x8x128xf32>
      %31 = vector.shape_cast %30 : vector<1x8x128xf32> to vector<8x128xf32>
      %32 = vector.shape_cast %29 : vector<8x128xf32> to vector<1x8x128xf32>
      tpu.vector_store %arg4[%c0_17, %c0_18, %c0_19], %32 {strides = array<i32>} : memref<1x8x128xf32, #tpu.memory_space<vmem>>, vector<1x8x128xf32>,
    } else {
    }
    return
  }
  func.func @transform_0(%arg0: i32, %arg1: i32) -> (i32, i32, i32) {
    %c0_i32 = arith.constant 0 : i32
    %c0_i32_0 = arith.constant 0 : i32
    %c0_i32_1 = arith.constant 0 : i32
    return %arg0, %c0_i32, %c0_i32_0 : i32, i32, i32
  }
  func.func @transform_1(%arg0: i32, %arg1: i32) -> (i32, i32, i32) {
    %c0_i32 = arith.constant 0 : i32
    %c0_i32_0 = arith.constant 0 : i32
    return %arg0, %c0_i32, %arg1 : i32, i32, i32
  }
  func.func @transform_2(%arg0: i32, %arg1: i32) -> (i32, i32, i32) {
    %c0_i32 = arith.constant 0 : i32
    %c0_i32_0 = arith.constant 0 : i32
    %c0_i32_1 = arith.constant 0 : i32
    return %arg0, %c0_i32, %c0_i32_0 : i32, i32, i32
  }
}

</mosaic_0001>

<bundles_post_ra>
// kernel: tpu_custom_call.1
= control target key start
LH: loop header
LB: loop body
LE: loop exit
PB: predicated region body
PF: predicated region fallthrough
CT: control target
= control target key end

     0   :  { %7 = vsyncpa [#allocation5], 0  ;;  %s1930_s0 = inlined_call_operand.vmem [shape: f32[2,128,8], index: 0, kind: input, shape index: {}]   ;;  %s1931_s1 = inlined_call_operand.vmem [shape: f32[2,8,128], index: 1, kind: input, shape index: {}]   ;;  %s1932_s2 = inlined_call_operand.hbm [shape: f32[2,8,128], index: 2, kind: output, shape index: {}]  }
   0x1   :  { %9 = vsyncpa [#allocation5 + $0x1], 0  ;;  %s1635_s9 = smov 0   ;;  %s1637_s10 = smov 0  }
   0x2   :  { %s1639_s11 = smov 0   ;;  %s1641_s12 = smov 0  }
   0x3   :  { %s1643_s13 = smov 0   ;;  %s1645_s14 = smov 0  }
   0x4 LB: > { %s1251_s15 = sadd.s32 4294967295, %s1607_s14   ;;  %s1252_s16 = sadd.s32 4294967294, %s1607_s14   ;;  %s1607_s14 = sphi %s1645_s14, %s15_s14   ;;  %s1603_s13 = sphi %s1643_s13, %s1940_s13   ;;  %s1599_s12 = sphi %s1641_s12, %s1939_s12   ;;  %s1595_s11 = sphi %s1639_s11, %s1938_s11   ;;  %s1591_s10 = sphi %s1637_s10, %s1937_s10   ;;  %s1587_s9 = sphi %s1635_s9, %s1936_s9  }
   0x5   : > { %s27_s17 = sadd.s32 1, %s1603_s13  ;;  %s88_s18 = sadd.s32 1, %s1595_s11 }
   0x6   : > { %p29_p0 = scmp.ge.s32.totalorder %s27_s17, 2  ;;  %p98_p1 = scmp.ne.s32.totalorder %s1595_s11, %s1591_s10 }
   0x7   : > { %p99_p2 = scmp.eq.s32.totalorder %s1251_s15, 1  ;;  %p104_p3 = scmp.ne.s32.totalorder %s1591_s10, %s1587_s9 }
   0x8   : > { %s1942_s17 = smov (%p29_p0, %s27_s17), 0  ;;  %p105_p5 = scmp.eq.s32.totalorder %s1252_s16, 1 }
   0x9   : > { %p1675_p4 = por %p99_p2, %p98_p1  ;;  %s85_s20 = ssub.s32 %s1603_s13, %s1942_s17 }
   0xa   : > { %p1255_p6 = scmp.ge.s32.totalorder %s1607_s14, 1  ;;  %p86_p7 = scmp.eq.s32.totalorder %s85_s20, 0 }
   0xb   : > { %p1682_p8 = por %p105_p5, %p104_p3  ;;  %p141_p9 = scmp.lt.s32.totalorder %s1607_s14, 3 }
   0xc   : > { %s1688_s22 = scalar_select %p86_p7, %s1595_s11, %s88_s18  }
   0xd   : > { %p142_p10 = pnand %p1255_p6, %p141_p9 }
   0xe   : > { %s167_s23 = sand.u32 (!%p142_p10), 1, %s1591_s10   ;;  %p170_p11 = scmp.lt.s32.totalorder (!%p142_p10), %s1599_s12, 1  ;;  %v1617_v0 = vmov (!%p142_p10), inf   ;;  %v1618_v1 = vmov (!%p142_p10), 0.0   ;;  %v1710_v2 = vmov (!%p142_p10), inf  }
   0xf   : > { %145 = sbr.rel (%p142_p10) target bundleno = 709 (0x2c5), region = 28  ;;  %s1694_s24 = sshll.u32 (!%p142_p10), %s167_s23, 3  ;;  %186 = vst [vmem:[#allocation2] sm:$0xff] (!%p142_p10), %v1617_v0  ;;  %187 = vst [vmem:[#allocation2 + $0x8] sm:$0xff] (!%p142_p10), %v1617_v0 }
  0x10   : > { %188 = vst [vmem:[#allocation2 + $0x10] sm:$0xff] (!%p142_p10), %v1617_v0  ;;  %189 = vst [vmem:[#allocation2 + $0x18] sm:$0xff] (!%p142_p10), %v1617_v0  ;;  %s169_s6 = scalar_lea.vmem (!%p142_p10), [#allocation4], %s1694_s24  ;;  %s1712_s7 = smov (!%p142_p10), 0  }
  0x11   : > { %190 = vst [vmem:[#allocation2 + $0x20] sm:$0xff] (!%p142_p10), %v1617_v0  ;;  %191 = vst [vmem:[#allocation2 + $0x28] sm:$0xff] (!%p142_p10), %v1617_v0 }
  0x12   : > { %192 = vst [vmem:[#allocation2 + $0x30] sm:$0xff] (!%p142_p10), %v1617_v0  ;;  %193 = vst [vmem:[#allocation2 + $0x38] sm:$0xff] (!%p142_p10), %v1617_v0 }
  0x13   : > { %194 = vst [vmem:[#allocation2 + $0x40] sm:$0xff] (!%p142_p10), %v1617_v0  ;;  %195 = vst [vmem:[#allocation2 + $0x48] sm:$0xff] (!%p142_p10), %v1617_v0 }
  0x14   : > { %196 = vst [vmem:[#allocation2 + $0x50] sm:$0xff] (!%p142_p10), %v1617_v0  ;;  %197 = vst [vmem:[#allocation2 + $0x58] sm:$0xff] (!%p142_p10), %v1617_v0 }
  0x15   : > { %198 = vst [vmem:[#allocation2 + $0x60] sm:$0xff] (!%p142_p10), %v1617_v0  ;;  %199 = vst [vmem:[#allocation2 + $0x68] sm:$0xff] (!%p142_p10), %v1617_v0 }
  0x16   : > { %200 = vst [vmem:[#allocation2 + $0x70] sm:$0xff] %v1617_v0  ;;  %201 = vst [vmem:[#allocation2 + $0x78] sm:$0xff] %v1617_v0  ;;  %s171_s25 = scalar_select %p170_p11, %s1599_s12, 1 }
  0x17   : > { %202 = vst [vmem:[#allocation3] sm:$0x1] %v1618_v1 }
  0x18   : > { %s1265_s26 = sshll.u32 %s171_s25, 7  ;;  %s1259_s27 = sshll.u32 %s171_s25, 3 }
  0x19   : > { %s1702_s30 = scalar_lea.vmem %s1930_s0, %s1265_s26  ;;  %s1707_s5 = scalar_lea.vmem %s1931_s1, %s1259_s27 }
  0x1a LB: >> { %v229_v3 = vld [vmem:[%s1707_s5] sm:$0xff]  ;;  %s1260_s8 = sshll.u32 %s1615_s7, 6  ;;  %vm230_vm0 = vcmask 64512   ;;  %s208_s7 = sadd.s32 1, %s1615_s7   ;;  %s1615_s7 = sphi %s1712_s7, %s208_s7   ;;  %v1611_v2 = vphi %v1710_v2, %v1935_v2  }
  0x1b   : >> { %v1721_v4 = vand.u32 4294901760, %v229_v3  ;;  %s211_s15 = scalar_lea.vmem %s1702_s30, %s1260_s8  ;;  %s1833_s16 = scalar_lea.vmem [#allocation2], %s1260_s8 }
  0x1c   : >> { %v212_v6 = vld [vmem:[%s211_s15] sm:$0xff]  ;;  %v213_v7 = vld [vmem:[%s211_s15 + $0x8] sm:$0xff]  ;;  %v214_v8 = vld [vmem:[%s211_s15 + $0x10] sm:$0xff]  ;;  %p205_p12 = scmp.ge.s32.totalorder %s208_s7, 2  }
  0x1d   : >> { %1362 = vmatprep.subr.mxu0 %v1721_v4  ;;  %1320 = vmatprep.subr.mxu1 %v1721_v4  ;;  %v1730_v5 = vsub.f32 %v229_v3, %v1721_v4  ;;  %v232_v9 = vsel %vm230_vm0, %v212_v6, 0  ;;  %v235_v10 = vsel %vm230_vm0, %v213_v7, 0  ;;  %v238_v12 = vsel %vm230_vm0, %v214_v8, 0  ;;  %v215_v13 = vld [vmem:[%s211_s15 + $0x18] sm:$0xff]  ;;  %v216_v14 = vld [vmem:[%s211_s15 + $0x20] sm:$0xff]  ;;  %v217_v19 = vld [vmem:[%s211_s15 + $0x28] sm:$0xff] }
  0x1e   : >> { %1363 = vmatpush3.msra.mxu0 %v1721_v4  ;;  %1321 = vmatpush3.msra.mxu1 %v1721_v4  ;;  %v1738_v15 = vand.u32 4294901760, %v232_v9  ;;  %v1740_v16 = vand.u32 4294901760, %v235_v10  ;;  %v1742_v17 = vand.u32 4294901760, %v238_v12  ;;  %v241_v18 = vsel %vm230_vm0, %v215_v13, 0  ;;  %v218_v20 = vld [vmem:[%s211_s15 + $0x30] sm:$0xff]  ;;  %v219_v29 = vld [vmem:[%s211_s15 + $0x38] sm:$0xff] }
  0x1f   : >> { %v404_v11 = vand.u32 4294901760, %v1730_v5  ;;  %v1746_v22 = vand.u32 4294901760, %v241_v18  ;;  %v244_v23 = vsel %vm230_vm0, %v216_v14, 0  ;;  %v247_v24 = vsel %vm230_vm0, %v217_v19, 0  ;;  %v221_v8 = vld [vmem:[%s1833_s16] sm:$0xff]  ;;  %v223_v19 = vld [vmem:[%s1833_s16 + $0x10] sm:$0xff] }
  0x20   : >> { %v1751_v25 = vsub.f32 %v232_v9, %v1738_v15  ;;  %v1754_v26 = vsub.f32 %v235_v10, %v1740_v16  ;;  %v1757_v27 = vsub.f32 %v238_v12, %v1742_v17  ;;  %v1759_v28 = vand.u32 4294901760, %v244_v23  ;;  %s1262_s18 = sshll.u32 (%p205_p12), %s1599_s12, 7  ;;  %s1157_s25 = sshll.u32 (%p205_p12), %s169_s6, 4  ;;  %s1881_s25 = int_to_ptr.vmem [resolvable:$true] %s1157_s25 }
  0x21   : >> { %v405_v21 = vsub.f32 %v1730_v5, %v404_v11  ;;  %1376 = vmatprep.subr.mxu0 %v404_v11  ;;  %v1762_v31 = vsub.f32 %v241_v18, %v1746_v22  ;;  %v1764_v32 = vand.u32 4294901760, %v247_v24  ;;  %v250_v33 = vsel %vm230_vm0, %v218_v20, 0  ;;  %s1879_s30 = scalar_lea.hbm (%p205_p12), %s1932_s2, %s1262_s18  ;;  %s1144_s12 = scalar_lea.sflag (%p205_p12), [#allocation5], %s167_s23 }
  0x22   : >> { %v323_v34 = vand.u32 4294901760, %v1751_v25  ;;  %v333_v35 = vand.u32 4294901760, %v1754_v26  ;;  %v343_v36 = vand.u32 4294901760, %v1757_v27  ;;  %v1771_v37 = vsub.f32 %v244_v23, %v1759_v28  ;;  %s1521_s3 = scalar_lea.vmem (%p205_p12), %s1881_s25, 128  ;;  %s1619_s4 = smov (%p205_p12), [#allocation4]  }
  0x23   : >> { %v406_v30 = vand.u32 4294901760, %v405_v21  ;;  %v353_v38 = vand.u32 4294901760, %v1762_v31  ;;  %v1775_v39 = vsub.f32 %v247_v24, %v1764_v32  ;;  %v1777_v40 = vand.u32 4294901760, %v250_v33  ;;  %p1522_p13 = scmp.ne.s32.totalorder (%p205_p12), %s1881_s25, %s1521_s3  ;;  %s1525_s5 = sshll.u32 (%p205_p12), %s1619_s4, 4  ;;  %s1526_s5 = int_to_ptr.vmem [resolvable:$false] %s1525_s5 }
  0x24   : >> { %v253_v41 = vsel %vm230_vm0, %v219_v29, 0  ;;  %1364 = vmatprep.mubr.f32.mxu0 %v323_v34  ;;  %v324_v42 = vsub.f32 %v1751_v25, %v323_v34  ;;  %v334_v43 = vsub.f32 %v1754_v26, %v333_v35  ;;  %v344_v44 = vsub.f32 %v1757_v27, %v343_v36  ;;  %s1527_s7 = scalar_lea.vmem (%p205_p12), %s1526_s5, 256  ;;  %p1528_p2 = scmp.lt.s32.totalorder (%p205_p12), %s1881_s25, %s1526_s5 }
  0x25   : >> { %1334 = vmatprep.subr.mxu1 %v406_v30  ;;  %v363_v45 = vand.u32 4294901760, %v1771_v37  ;;  %1365 = vmatmul.mubr.f32.vlgmr.msra.gmra.mrb[0].mxu0 %v333_v35  ;;  %v354_v46 = vsub.f32 %v1762_v31, %v353_v38  ;;  %v373_v47 = vand.u32 4294901760, %v1775_v39  ;;  %v1787_v48 = vsub.f32 %v250_v33, %v1777_v40  ;;  %p1523_p0 = pnand (%p205_p12), %p1522_p13, %p1675_p4  ;;  %p1529_p3 = scmp.lt.s32.totalorder (%p205_p12), %s1527_s7, %s1521_s3 }
  0x26   : >> { %v1789_v49 = vand.u32 4294901760, %v253_v41  ;;  %v325_v50 = vand.u32 4294901760, %v324_v42  ;;  %1367 = vmatprep.mubr.f32.mxu0 %v343_v36  ;;  %v335_v51 = vand.u32 4294901760, %v334_v43  ;;  %1377 = vmatpush3.msra.mxu0 %v404_v11  ;;  %v345_v52 = vand.u32 4294901760, %v344_v44 }
  0x27   : >> { %v364_v53 = vsub.f32 %v1771_v37, %v363_v45  ;;  %v383_v54 = vand.u32 4294901760, %v1787_v48  ;;  %1390 = vmatprep.subr.mxu0 %v1721_v4  ;;  %v355_v56 = vand.u32 4294901760, %v354_v46  ;;  %v374_v57 = vsub.f32 %v1775_v39, %v373_v47  ;;  %p1524_p1 = pneg (%p205_p12), %p1523_p0  ;;  %p1530_p5 = por (%p205_p12), %p1529_p3, %p1528_p2 }
  0x28   : >> { %v392_v55 = vsub.f32 %v253_v41, %v1789_v49  ;;  %1322 = vmatprep.mubr.f32.mxu1 %v325_v50  ;;  %v227_v41 = vld [vmem:[%s1833_s16 + $0x30] sm:$0xff]  ;;  %vm1129_vm1 = vcmask (%p205_p12), 1040384   ;;  %vm1087_vm2 = vcmask (%p205_p12), 7168  }
  0x29   : >> { %1323 = vmatmul.mubr.f32.vlgmr.msra.gmra.mrb[0].mxu1 %v335_v51  ;;  %1368 = vmatmul.mubr.f32.gmra.mrb[2].mxu0 %v353_v38  ;;  %v365_v59 = vand.u32 4294901760, %v364_v53  ;;  %v384_v60 = vsub.f32 %v1787_v48, %v383_v54  ;;  %v375_v61 = vand.u32 4294901760, %v374_v57  ;;  %v228_v38 = vld [vmem:[%s1833_s16 + $0x38] sm:$0xff]  ;;  %p1531_p6 = pnand (%p205_p12), %p1530_p5, %p1524_p1 }
  0x2a   : >> { %v393_v58 = vand.u32 4294901760, %v392_v55  ;;  %1335 = vmatpush3.msra.mxu1 %v406_v30  ;;  %1325 = vmatprep.mubr.f32.mxu1 %v345_v52  ;;  %v225_v30 = vld [vmem:[%s1833_s16 + $0x20] sm:$0xff] }
  0x2b   : >> { %1370 = vmatprep.mubr.f32.mxu0 %v363_v45  ;;  %1348 = vmatprep.subr.mxu1 %v1730_v5  ;;  %v385_v63 = vand.u32 4294901760, %v384_v60 }
  0x2c   : >> { %v394_v62 = vsub.f32 %v392_v55, %v393_v58 }
  0x2d   : >> { %1326 = vmatmul.mubr.f32.gmra.mrb[2].mxu1 %v355_v56  ;;  %1371 = vmatmul.mubr.f32.gmra.mrb[4].mxu0 %v373_v47 }
  0x2e   : >> { %1328 = vmatprep.mubr.f32.mxu1 %v365_v59  ;;  %1373 = vmatprep.mubr.f32.mxu0 %v383_v54  ;;  %v395_v0 = vand.u32 4294901760, %v394_v62 }
  0x31   : >> { %1329 = vmatmul.mubr.f32.gmra.mrb[4].mxu1 %v375_v61  ;;  %1374 = vmatmul.mubr.f32.gmra.mrb[6].mxu0 %v393_v58 }
  0x32   : >> { %1331 = vmatprep.mubr.f32.mxu1 %v385_v63  ;;  %1378 = vmatprep.mubr.f32.mxu0 %v1738_v15 }
  0x35   : >> { %1332 = vmatmul.mubr.f32.gmra.mrb[6].mxu1 %v395_v0  ;;  %1379 = vmatmul.mubr.f32.vlgmr.msra.gmra.mrb[0].mxu0 %v1740_v16 }
  0x36   : >> { %1336 = vmatprep.mubr.f32.mxu1 %v1738_v15  ;;  %1381 = vmatprep.mubr.f32.mxu0 %v1742_v17 }
  0x37   : >> { %1391 = vmatpush3.msra.mxu0 %v1721_v4  ;;  %v222_v4 = vld [vmem:[%s1833_s16 + $0x8] sm:$0xff] }
  0x39   : >> { %1337 = vmatmul.mubr.f32.vlgmr.msra.gmra.mrb[0].mxu1 %v1740_v16  ;;  %1382 = vmatmul.mubr.f32.gmra.mrb[2].mxu0 %v1746_v22 }
  0x3a   : >> { %1349 = vmatpush3.msra.mxu1 %v1730_v5  ;;  %1339 = vmatprep.mubr.f32.mxu1 %v1742_v17 }
  0x3b   : >> { %1384 = vmatprep.mubr.f32.mxu0 %v1759_v28 }
  0x3d   : >> { %1340 = vmatmul.mubr.f32.gmra.mrb[2].mxu1 %v1746_v22  ;;  %1385 = vmatmul.mubr.f32.gmra.mrb[4].mxu0 %v1764_v32 }
  0x3e   : >> { %1342 = vmatprep.mubr.f32.mxu1 %v1759_v28  ;;  %1387 = vmatprep.mubr.f32.mxu0 %v1777_v40 }
  0x41   : >> { %1343 = vmatmul.mubr.f32.gmra.mrb[4].mxu1 %v1764_v32  ;;  %1388 = vmatmul.mubr.f32.gmra.mrb[6].mxu0 %v1789_v49 }
  0x42   : >> { %1345 = vmatprep.mubr.f32.mxu1 %v1777_v40  ;;  %1392 = vmatprep.mubr.f32.mxu0 %v1738_v15  ;;  %v224_v15 = vld [vmem:[%s1833_s16 + $0x18] sm:$0xff] }
  0x45   : >> { %1346 = vmatmul.mubr.f32.gmra.mrb[6].mxu1 %v1789_v49  ;;  %1393 = vmatmul.mubr.f32.vlgmr.msra.gmra.mrb[0].mxu0 %v1740_v16 }
  0x46   : >> { %1350 = vmatprep.mubr.f32.mxu1 %v1751_v25  ;;  %1395 = vmatprep.mubr.f32.mxu0 %v1742_v17 }
  0x49   : >> { %1351 = vmatmul.mubr.f32.vlgmr.msra.gmra.mrb[0].mxu1 %v1754_v26  ;;  %1396 = vmatmul.mubr.f32.gmra.mrb[2].mxu0 %v1746_v22  ;;  %v226_v26 = vld [vmem:[%s1833_s16 + $0x28] sm:$0xff] }
  0x4a   : >> { %1353 = vmatprep.mubr.f32.mxu1 %v1757_v27  ;;  %1398 = vmatprep.mubr.f32.mxu0 %v1759_v28 }
  0x4d   : >> { %1354 = vmatmul.mubr.f32.gmra.mrb[2].mxu1 %v1762_v31  ;;  %1399 = vmatmul.mubr.f32.gmra.mrb[4].mxu0 %v1764_v32 }
  0x4e   : >> { %1356 = vmatprep.mubr.f32.mxu1 %v1771_v37  ;;  %1401 = vmatprep.mubr.f32.mxu0 %v1777_v40 }
  0x51   : >> { %1357 = vmatmul.mubr.f32.gmra.mrb[4].mxu1 %v1775_v39  ;;  %1402 = vmatmul.mubr.f32.gmra.mrb[6].mxu0 %v1789_v49 }
  0x52   : >> { %1359 = vmatprep.mubr.f32.mxu1 %v1787_v48 }
  0x55   : >> { %1360 = vmatmul.mubr.f32.gmra.mrb[6].mxu1 %v392_v55 }
 0x118   : >> { %v1394_v1 = vpop.f32.mrb[0].mxu0 }
 0x119   : >> { %v956_v3 = vpop.f32.mrb[1].mxu0 }
 0x11c   : >> { %v1352_v5 = vpop.f32.mrb[0].mxu1  ;;  %v1397_v6 = vpop.f32.mrb[2].mxu0 }
 0x11d   : >> { %v1404_v7 = vadd.f32 %v1394_v1, %v1352_v5  ;;  %v589_v9 = vpop.f32.mrb[1].mxu1  ;;  %v968_v10 = vpop.f32.mrb[3].mxu0 }
 0x11e   : >> { %v1405_v11 = vadd.f32 %v956_v3, %v589_v9 }
 0x11f   : >> { %v1003_v12 = vmin.f32 %v222_v4, %v1404_v7 }
 0x120   : >> { %v1002_v13 = vmin.f32 %v221_v8, %v1405_v11  ;;  %v1010_v14 = vmin.f32 %v1405_v11, %v1404_v7  ;;  %v1355_v16 = vpop.f32.mrb[2].mxu1  ;;  %v1400_v17 = vpop.f32.mrb[4].mxu0  ;;  %v1033_v8 = vld [vmem:[#allocation3] sm:$0x1] (%p205_p12) }
 0x121   : >> { %1019 = vst [vmem:[%s1833_s16 + $0x8] sm:$0xff] %v1003_v12  ;;  %v1406_v18 = vadd.f32 %v1397_v6, %v1355_v16  ;;  %v603_v20 = vpop.f32.mrb[3].mxu1  ;;  %v980_v21 = vpop.f32.mrb[5].mxu0 }
 0x122   : >> { %1018 = vst [vmem:[%s1833_s16] sm:$0xff] %v1002_v13  ;;  %v1407_v22 = vadd.f32 %v968_v10, %v603_v20 }
 0x123   : >> { %v1005_v23 = vmin.f32 %v224_v15, %v1406_v18 }
 0x124   : >> { %v1004_v24 = vmin.f32 %v223_v19, %v1407_v22  ;;  %v1011_v25 = vmin.f32 %v1010_v14, %v1407_v22  ;;  %v1358_v27 = vpop.f32.mrb[4].mxu1  ;;  %v1403_v28 = vpop.f32.mrb[6].mxu0 }
 0x125   : >> { %1021 = vst [vmem:[%s1833_s16 + $0x18] sm:$0xff] %v1005_v23  ;;  %v1408_v29 = vadd.f32 %v1400_v17, %v1358_v27  ;;  %v617_v31 = vpop.f32.mrb[5].mxu1  ;;  %v992_v32 = vpop.f32.mrb[7].mxu0 }
 0x126   : >> { %1020 = vst [vmem:[%s1833_s16 + $0x10] sm:$0xff] %v1004_v24  ;;  %v1409_v33 = vadd.f32 %v980_v21, %v617_v31  ;;  %v1012_v34 = vmin.f32 %v1011_v25, %v1406_v18 }
 0x127   : >> { %v1007_v35 = vmin.f32 %v226_v26, %v1408_v29 }
 0x128   : >> { %v1006_v36 = vmin.f32 %v225_v30, %v1409_v33  ;;  %v1013_v37 = vmin.f32 %v1012_v34, %v1409_v33  ;;  %v1361_v39 = vpop.f32.mrb[6].mxu1 }
 0x129   : >> { %1023 = vst [vmem:[%s1833_s16 + $0x28] sm:$0xff] %v1007_v35  ;;  %v1410_v40 = vadd.f32 %v1403_v28, %v1361_v39  ;;  %v631_v42 = vpop.f32.mrb[7].mxu1 }
 0x12a   : >> { %1022 = vst [vmem:[%s1833_s16 + $0x20] sm:$0xff] %v1006_v36  ;;  %v1411_v43 = vadd.f32 %v992_v32, %v631_v42  ;;  %v1014_v44 = vmin.f32 %v1013_v37, %v1408_v29 }
 0x12b   : >> { %v1009_v45 = vmin.f32 %v228_v38, %v1410_v40 }
 0x12c   : >> { %v1008_v46 = vmin.f32 %v227_v41, %v1411_v43  ;;  %v1015_v47 = vmin.f32 %v1014_v44, %v1411_v43  ;;  %207 = sbr.rel (!%p205_p12) target bundleno = 26 (0x1a), region = 83 }
 0x12d   : >> { %1025 = vst [vmem:[%s1833_s16 + $0x38] sm:$0xff] %v1009_v45 }
 0x12e   : >> { %v1016_v48 = vmin.f32 %v1015_v47, %v1410_v40  ;;  %1024 = vst [vmem:[%s1833_s16 + $0x30] sm:$0xff] %v1008_v46 }
 0x130   : >> { %v1017_v49 = vmin.f32 %v1611_v2, %v1016_v48  }
 0x132   : >> { %v1935_v2 = vmov %v1017_v49  ;;  %v1026_v61 = vrot.slane (%p205_p12), %v1017_v49, 4 }
 0x134   : > { %v1027_v0 = vmin.f32 %v1017_v49, %v1026_v61 }
 0x135   : > { %v1039_v50 = vld [vmem:[#allocation2] sm:$0xff]  ;;  %v1041_v51 = vld [vmem:[#allocation2 + $0x10] sm:$0xff]  ;;  %v1040_v52 = vld [vmem:[#allocation2 + $0x8] sm:$0xff] }
 0x136   : > { %1055 = vmin.xlane.f32.xlu0 %v1039_v50  ;;  %1059 = vmin.xlane.f32.xlu1 %v1041_v51  ;;  %v1042_v53 = vld [vmem:[#allocation2 + $0x18] sm:$0xff]  ;;  %v1043_v54 = vld [vmem:[#allocation2 + $0x20] sm:$0xff]  ;;  %v1044_v55 = vld [vmem:[#allocation2 + $0x28] sm:$0xff]  ;;  %v1028_v1 = vrot.slane %v1027_v0, 2 }
 0x137   : > { %v1045_v2 = vld [vmem:[#allocation2 + $0x30] sm:$0xff]  ;;  %v1046_v56 = vld [vmem:[#allocation2 + $0x38] sm:$0xff]  ;;  %v1047_v57 = vld [vmem:[#allocation2 + $0x40] sm:$0xff] }
 0x138   : > { %v1048_v58 = vld [vmem:[#allocation2 + $0x48] sm:$0xff]  ;;  %v1049_v59 = vld [vmem:[#allocation2 + $0x50] sm:$0xff]  ;;  %v1050_v60 = vld [vmem:[#allocation2 + $0x58] sm:$0xff]  ;;  %v1029_v5 = vmin.f32 %v1027_v0, %v1028_v1 }
 0x139   : > { %v1051_v62 = vld [vmem:[#allocation2 + $0x60] sm:$0xff]  ;;  %v1052_v63 = vld [vmem:[#allocation2 + $0x68] sm:$0xff]  ;;  %v1053_v3 = vld [vmem:[#allocation2 + $0x70] sm:$0xff] }
 0x13a   : > { %1057 = vmin.xlane.f32.xlu0 %v1040_v52  ;;  %1061 = vmin.xlane.f32.xlu1 %v1042_v53  ;;  %v1054_v4 = vld [vmem:[#allocation2 + $0x78] sm:$0xff]  ;;  %v1030_v6 = vrot.slane %v1029_v5, 1 }
 0x13c   : > { %v1031_v7 = vmin.f32 %v1029_v5, %v1030_v6 }
 0x13e   : > { %1063 = vmin.xlane.f32.xlu0 %v1043_v54  ;;  %1065 = vmin.xlane.f32.xlu1 %v1044_v55  ;;  %v1034_v9 = vadd.f32 %v1033_v8, %v1031_v7 }
 0x140   : > { %1035 = vst [vmem:[#allocation3] sm:$0x1] %v1034_v9 }
 0x142   : > { %1067 = vmin.xlane.f32.xlu0 %v1045_v2  ;;  %1069 = vmin.xlane.f32.xlu1 %v1046_v56 }
 0x146   : > { %1071 = vmin.xlane.f32.xlu0 %v1047_v57  ;;  %1073 = vmin.xlane.f32.xlu1 %v1048_v58 }
 0x147   : > { %v1128_v10 = vld [vmem:[#allocation3] sm:$0x1] }
 0x148   : > { %v1130_v11 = vsel %vm1129_vm1, %v1128_v10, 0.0 }
 0x14a   : > { %1075 = vmin.xlane.f32.xlu0 %v1049_v59  ;;  %1077 = vmin.xlane.f32.xlu1 %v1050_v60 }
 0x14e   : > { %1079 = vmin.xlane.f32.xlu0 %v1051_v62  ;;  %1081 = vmin.xlane.f32.xlu1 %v1052_v63 }
 0x152   : > { %1083 = vmin.xlane.f32.xlu0 %v1053_v3  ;;  %1085 = vmin.xlane.f32.xlu1 %v1054_v4 }
 0x156   : > { %1131 = vadd.xlane.f32.xlu1 %v1130_v11 }
 0x1c3   : > { %v1056_v12 = vpop.xlane.xlu0 %1055  ;;  %v1060_v13 = vpop.xlane.xlu1 %1059 }
 0x1c4   : > { %v1088_v16 = vsel %vm1087_vm2, %v1056_v12, 0.0  ;;  %v1091_v19 = vsel %vm1087_vm2, %v1060_v13, 0.0 }
 0x1c7   : > { %v1058_v14 = vpop.xlane.xlu0 %1057  ;;  %v1062_v15 = vpop.xlane.xlu1 %1061 }
 0x1c8   : > { %v1089_v17 = vsel %vm1087_vm2, %v1058_v14, 0.0  ;;  %v1093_v20 = vsel %vm1087_vm2, %v1062_v15, 0.0 }
 0x1c9   : > { %v1090_v18 = vadd.f32 %v1089_v17, %v1088_v16 }
 0x1cb   : > { %v1092_v21 = vadd.f32 %v1091_v19, %v1090_v18  ;;  %v1064_v22 = vpop.xlane.xlu0 %1063  ;;  %v1066_v23 = vpop.xlane.xlu1 %1065 }
 0x1cc   : > { %v1095_v24 = vsel %vm1087_vm2, %v1064_v22, 0.0  ;;  %v1097_v26 = vsel %vm1087_vm2, %v1066_v23, 0.0 }
 0x1cd   : > { %v1094_v25 = vadd.f32 %v1093_v20, %v1092_v21 }
 0x1cf   : > { %v1096_v27 = vadd.f32 %v1095_v24, %v1094_v25  ;;  %v1068_v28 = vpop.xlane.xlu0 %1067  ;;  %v1070_v29 = vpop.xlane.xlu1 %1069 }
 0x1d0   : > { %v1099_v30 = vsel %vm1087_vm2, %v1068_v28, 0.0  ;;  %v1101_v32 = vsel %vm1087_vm2, %v1070_v29, 0.0 }
 0x1d1   : > { %v1098_v31 = vadd.f32 %v1097_v26, %v1096_v27 }
 0x1d3   : > { %v1100_v33 = vadd.f32 %v1099_v30, %v1098_v31  ;;  %v1072_v34 = vpop.xlane.xlu0 %1071  ;;  %v1074_v35 = vpop.xlane.xlu1 %1073 }
 0x1d4   : > { %v1103_v36 = vsel %vm1087_vm2, %v1072_v34, 0.0  ;;  %v1105_v38 = vsel %vm1087_vm2, %v1074_v35, 0.0 }
 0x1d5   : > { %v1102_v37 = vadd.f32 %v1101_v32, %v1100_v33 }
 0x1d7   : > { %v1104_v39 = vadd.f32 %v1103_v36, %v1102_v37  ;;  %v1076_v40 = vpop.xlane.xlu0 %1075  ;;  %v1078_v41 = vpop.xlane.xlu1 %1077 }
 0x1d8   : > { %v1107_v42 = vsel %vm1087_vm2, %v1076_v40, 0.0  ;;  %v1109_v44 = vsel %vm1087_vm2, %v1078_v41, 0.0 }
 0x1d9   : > { %v1106_v43 = vadd.f32 %v1105_v38, %v1104_v39 }
 0x1db   : > { %v1108_v45 = vadd.f32 %v1107_v42, %v1106_v43  ;;  %v1080_v46 = vpop.xlane.xlu0 %1079  ;;  %v1082_v47 = vpop.xlane.xlu1 %1081 }
 0x1dc   : > { %v1111_v48 = vsel %vm1087_vm2, %v1080_v46, 0.0  ;;  %v1113_v50 = vsel %vm1087_vm2, %v1082_v47, 0.0 }
 0x1dd   : > { %v1110_v49 = vadd.f32 %v1109_v44, %v1108_v45 }
 0x1df   : > { %v1112_v51 = vadd.f32 %v1111_v48, %v1110_v49  ;;  %v1084_v52 = vpop.xlane.xlu0 %1083  ;;  %v1086_v53 = vpop.xlane.xlu1 %1085 }
 0x1e0   : > { %v1115_v54 = vsel %vm1087_vm2, %v1084_v52, 0.0  ;;  %v1117_v2 = vsel %vm1087_vm2, %v1086_v53, 0.0 }
 0x1e1   : > { %v1114_v55 = vadd.f32 %v1113_v50, %v1112_v51 }
 0x1e3   : > { %v1116_v56 = vadd.f32 %v1115_v54, %v1114_v55  ;;  %v1132_v58 = vpop.xlane.xlu1 %1131 }
 0x1e4   : > { %v1133_v59 = vrot.slane %v1132_v58, 4 }
 0x1e5   : > { %v1118_v57 = vadd.f32 %v1117_v2, %v1116_v56 }
 0x1e6   : > { %v1134_v60 = vadd.f32 %v1133_v59, %v1132_v58 }
 0x1e7   : > { %1119 = vadd.xlane.f32.xlu0 %v1118_v57 }
 0x1e8   : > { %v1135_v61 = vrot.slane %v1134_v60, 2 }
 0x1ea   : > { %v1136_v1 = vadd.f32 %v1135_v61, %v1134_v60 }
 0x1ec   : > { %v1137_v5 = vrot.slane %v1136_v1, 1 }
 0x1ee   : > { %v1138_v8 = vadd.f32 %v1137_v5, %v1136_v1 }
 0x274   : > { %v1120_v62 = vpop.xlane.xlu0 %1119 }
 0x275   : > { %v1121_v63 = vrot.slane %v1120_v62, 4 }
 0x277   : > { %v1122_v0 = vadd.f32 %v1121_v63, %v1120_v62 }
 0x279   : > { %v1123_v3 = vrot.slane %v1122_v0, 2 }
 0x27b   : > { %v1124_v4 = vadd.f32 %v1123_v3, %v1122_v0 }
 0x27d   : > { %v1125_v6 = vrot.slane %v1124_v4, 1 }
 0x27f   : > { %v1126_v7 = vadd.f32 %v1125_v6, %v1124_v4 }
 0x281   : > { %1444 = vpush %v1126_v7 }
 0x282   : > { %1446 = vpush %v1138_v8 }
 0x2b2   : > { %s1445_s20 = spop %1444 }
 0x2b3   : > { %s1447_s26 = spop %1446 }
 0x2b4   : > { %s1140_s27 = sadd.f32 %s1447_s26, %s1445_s20 }
 0x2b6   : > { %v1141_v9 = vstv %s1140_s27 }
 0x2b7   : > { %1142 = vst [vmem:[%s169_s6] sm:$0xff] %v1141_v9 }
 0x2b8   : > { %1534 = shalt.err (!%p1531_p6)
}
 0x2b9   : > { %s1535_s23 = scalar_lea.hbm %s1879_s30, 128  ;;  %s1539_s8 = scalar_lea.hbm %s1932_s2, 256 }
 0x2ba   : > { %p1536_p7 = scmp.ne.s32.totalorder %s1879_s30, %s1535_s23  ;;  %p1540_p11 = scmp.lt.u32.totalorder %s1879_s30, %s1932_s2 }
 0x2bb   : > { %p1541_p12 = scmp.lt.u32.totalorder %s1539_s8, %s1535_s23  ;;  %p1543_p0 = scmp.lt.u32.totalorder %s1535_s23, %s1879_s30 }
 0x2bc   : > { %p1537_p9 = pnand %p1536_p7, %p1675_p4 }
 0x2bd   : > { %p1542_p13 = por %p1541_p12, %p1540_p11 }
 0x2be   : > { %p1538_p10 = pneg %p1537_p9 }
 0x2bf   : > { %p1544_p1 = por %p1543_p0, %p1542_p13 }
 0x2c1   : > { %p1545_p2 = pnand %p1544_p1, %p1538_p10 }
 0x2c3   : > { %1548 = shalt.err (!%p1545_p2)
}
 0x2c4   : > { %1448 = dma.vmem_to_hbm [thread:$0]  (%p1675_p4), %s1881_s25, 128, %s1879_s30, %s1144_s12  }
 0x2c5 PF: > { %p1454_p3 = scmp.ge.s32.totalorder %s1607_s14, 2  ;;  %s1169_s18 = sand.u32 1, %s1587_s9  }
 0x2c6   : > { %s1170_s20 = scalar_lea.sflag [#allocation5], %s1169_s18 }
 0x2c7   : > { %p1451_p5 = pnand %p1454_p3, %p1682_p8 }
 0x2c9   : > { %1582 = dma.done.wait (!%p1451_p5), %s1170_s20, 128  }
 0x2ca   : > { %1584 = vsyncadd (!%p1451_p5), %s1170_s20, 4294967168  ;;  %s15_s14 = sadd.s32 1, %s1607_s14   ;;  %s1936_s9 = smov %s1591_s10 }
 0x2cb   : > { %p12_p6 = scmp.ge.s32.totalorder %s15_s14, 4   ;;  %s1937_s10 = smov %s1595_s11 }
 0x2cc   : > { %s1938_s11 = smov %s1688_s22  ;;  %s1939_s12 = smov %s1603_s13 }
 0x2cd   : > { %s1940_s13 = smov %s1942_s17  ;;  %14 = sbr.rel (!%p12_p6) target bundleno = 4 (0x4), region = 94 }
 0x2d4   :  { %1175 = vsyncpa [#allocation5], 1 }
 0x2d5   :  { %1177 = vsyncpa [#allocation5 + $0x1], 1 }

// kernel: tpu_custom_call.1
= control target key start
LH: loop header
LB: loop body
LE: loop exit
PB: predicated region body
PF: predicated region fallthrough
CT: control target
= control target key end

     0   :  { %7 = vsyncpa [#allocation5], 0  ;;  %s1041_s0 = inlined_call_operand.vmem [shape: f32[2,128,8], index: 0, kind: input, shape index: {}]   ;;  %s1042_s1 = inlined_call_operand.vmem [shape: f32[2,8,128], index: 1, kind: input, shape index: {}]   ;;  %s1043_s2 = inlined_call_operand.hbm [shape: f32[2,8,128], index: 2, kind: output, shape index: {}]  }
   0x1   :  { %9 = vsyncpa [#allocation5 + $0x1], 0  ;;  %s848_s9 = smov 0   ;;  %s850_s10 = smov 0  }
   0x2   :  { %s852_s11 = smov 0   ;;  %s854_s12 = smov 0  }
   0x3   :  { %s856_s13 = smov 0   ;;  %s858_s14 = smov 0  }
   0x4 LB: > { %s609_s15 = sadd.s32 4294967295, %s820_s14   ;;  %s610_s16 = sadd.s32 4294967294, %s820_s14   ;;  %s820_s14 = sphi %s858_s14, %s15_s14   ;;  %s816_s13 = sphi %s856_s13, %s1051_s13   ;;  %s812_s12 = sphi %s854_s12, %s1050_s12   ;;  %s808_s11 = sphi %s852_s11, %s1049_s11   ;;  %s804_s10 = sphi %s850_s10, %s1048_s10   ;;  %s800_s9 = sphi %s848_s9, %s1047_s9  }
   0x5   : > { %s27_s17 = sadd.s32 1, %s816_s13  ;;  %s88_s18 = sadd.s32 1, %s808_s11 }
   0x6   : > { %p29_p0 = scmp.ge.s32.totalorder %s27_s17, 2  ;;  %p98_p1 = scmp.ne.s32.totalorder %s808_s11, %s804_s10 }
   0x7   : > { %p99_p2 = scmp.eq.s32.totalorder %s609_s15, 1  ;;  %p104_p3 = scmp.ne.s32.totalorder %s804_s10, %s800_s9 }
   0x8   : > { %s1053_s17 = smov (%p29_p0, %s27_s17), 0  ;;  %p105_p5 = scmp.eq.s32.totalorder %s610_s16, 1 }
   0x9   : > { %p888_p4 = por %p99_p2, %p98_p1  ;;  %s85_s20 = ssub.s32 %s816_s13, %s1053_s17 }
   0xa   : > { %p613_p6 = scmp.ge.s32.totalorder %s820_s14, 1  ;;  %p86_p7 = scmp.eq.s32.totalorder %s85_s20, 0 }
   0xb   : > { %p895_p8 = por %p105_p5, %p104_p3  ;;  %p141_p9 = scmp.lt.s32.totalorder %s820_s14, 3 }
   0xc   : > { %s901_s22 = scalar_select %p86_p7, %s808_s11, %s88_s18  }
   0xd   : > { %p142_p10 = pnand %p613_p6, %p141_p9 }
   0xe   : > { %s167_s23 = sand.u32 (!%p142_p10), 1, %s804_s10   ;;  %p170_p11 = scmp.lt.s32.totalorder (!%p142_p10), %s812_s12, 1  ;;  %v830_v0 = vmov (!%p142_p10), inf   ;;  %v831_v1 = vmov (!%p142_p10), 0.0   ;;  %v923_v2 = vmov (!%p142_p10), inf  }
   0xf   : > { %145 = sbr.rel (%p142_p10) target bundleno = 657 (0x291), region = 28  ;;  %s907_s24 = sshll.u32 (!%p142_p10), %s167_s23, 3  ;;  %186 = vst [vmem:[#allocation2] sm:$0xff] (!%p142_p10), %v830_v0  ;;  %187 = vst [vmem:[#allocation2 + $0x8] sm:$0xff] (!%p142_p10), %v830_v0 }
  0x10   : > { %188 = vst [vmem:[#allocation2 + $0x10] sm:$0xff] (!%p142_p10), %v830_v0  ;;  %189 = vst [vmem:[#allocation2 + $0x18] sm:$0xff] (!%p142_p10), %v830_v0  ;;  %s169_s6 = scalar_lea.vmem (!%p142_p10), [#allocation4], %s907_s24  ;;  %s925_s7 = smov (!%p142_p10), 0  }
  0x11   : > { %190 = vst [vmem:[#allocation2 + $0x20] sm:$0xff] (!%p142_p10), %v830_v0  ;;  %191 = vst [vmem:[#allocation2 + $0x28] sm:$0xff] (!%p142_p10), %v830_v0 }
  0x12   : > { %192 = vst [vmem:[#allocation2 + $0x30] sm:$0xff] (!%p142_p10), %v830_v0  ;;  %193 = vst [vmem:[#allocation2 + $0x38] sm:$0xff] (!%p142_p10), %v830_v0 }
  0x13   : > { %194 = vst [vmem:[#allocation2 + $0x40] sm:$0xff] (!%p142_p10), %v830_v0  ;;  %195 = vst [vmem:[#allocation2 + $0x48] sm:$0xff] (!%p142_p10), %v830_v0 }
  0x14   : > { %196 = vst [vmem:[#allocation2 + $0x50] sm:$0xff] (!%p142_p10), %v830_v0  ;;  %197 = vst [vmem:[#allocation2 + $0x58] sm:$0xff] (!%p142_p10), %v830_v0 }
  0x15   : > { %198 = vst [vmem:[#allocation2 + $0x60] sm:$0xff] (!%p142_p10), %v830_v0  ;;  %199 = vst [vmem:[#allocation2 + $0x68] sm:$0xff] (!%p142_p10), %v830_v0 }
  0x16   : > { %200 = vst [vmem:[#allocation2 + $0x70] sm:$0xff] %v830_v0  ;;  %201 = vst [vmem:[#allocation2 + $0x78] sm:$0xff] %v830_v0  ;;  %s171_s25 = scalar_select %p170_p11, %s812_s12, 1 }
  0x17   : > { %202 = vst [vmem:[#allocation3] sm:$0x1] %v831_v1 }
  0x18   : > { %s631_s26 = sshll.u32 %s171_s25, 7  ;;  %s617_s27 = sshll.u32 %s171_s25, 3 }
  0x19   : > { %s915_s30 = scalar_lea.vmem %s1041_s0, %s631_s26  ;;  %s920_s5 = scalar_lea.vmem %s1042_s1, %s617_s27 }
  0x1a LB: >> { %v229_v3 = vld [vmem:[%s920_s5] sm:$0xff]  ;;  %s618_s8 = sshll.u32 %s828_s7, 6  ;;  %vm230_vm0 = vcmask 64512   ;;  %s208_s7 = sadd.s32 1, %s828_s7   ;;  %s828_s7 = sphi %s925_s7, %s208_s7   ;;  %v824_v2 = vphi %v923_v2, %v1046_v2  }
  0x1b   : >> { %641 = vmatprep.subr.mxu0 %v229_v3  ;;  %655 = vmatprep.subr.mxu1 %v229_v3  ;;  %s211_s15 = scalar_lea.vmem %s915_s30, %s618_s8  ;;  %s944_s16 = scalar_lea.vmem [#allocation2], %s618_s8 }
  0x1c   : >> { %642 = vmatpush3.msra.mxu0 %v229_v3  ;;  %656 = vmatpush3.msra.mxu1 %v229_v3  ;;  %v212_v4 = vld [vmem:[%s211_s15] sm:$0xff]  ;;  %v213_v5 = vld [vmem:[%s211_s15 + $0x8] sm:$0xff]  ;;  %v214_v6 = vld [vmem:[%s211_s15 + $0x10] sm:$0xff]  ;;  %p205_p12 = scmp.ge.s32.totalorder %s208_s7, 2  }
  0x1d   : >> { %643 = vmatprep.mubr.msk.f32.mxu0 %vm230_vm0, %v212_v4  ;;  %v216_v7 = vld [vmem:[%s211_s15 + $0x20] sm:$0xff]  ;;  %v217_v8 = vld [vmem:[%s211_s15 + $0x28] sm:$0xff]  ;;  %v218_v9 = vld [vmem:[%s211_s15 + $0x30] sm:$0xff]  ;;  %vm487_vm1 = vcmask (%p205_p12), 1040384   ;;  %vm445_vm2 = vcmask (%p205_p12), 7168   ;;  %s628_s18 = sshll.u32 (%p205_p12), %s812_s12, 7 }
  0x1e   : >> { %644 = vmatmul.mubr.msk.f32.vlgmr.msra.gmra.mrb[0].mxu0 %vm230_vm0, %v213_v5  ;;  %649 = vmatprep.mubr.msk.f32.mxu1 %vm230_vm0, %v216_v7  ;;  %v215_v10 = vld [vmem:[%s211_s15 + $0x18] sm:$0xff]  ;;  %v222_v12 = vld [vmem:[%s944_s16 + $0x8] sm:$0xff]  ;;  %v221_v13 = vld [vmem:[%s944_s16] sm:$0xff]  ;;  %s515_s25 = sshll.u32 (%p205_p12), %s169_s6, 4  ;;  %s990_s30 = scalar_lea.hbm (%p205_p12), %s1043_s2, %s628_s18  ;;  %s992_s25 = int_to_ptr.vmem [resolvable:$true] %s515_s25 }
  0x1f   : >> { %646 = vmatprep.mubr.msk.f32.mxu0 %vm230_vm0, %v214_v6  ;;  %650 = vmatmul.mubr.msk.f32.vlgmr.msra.gmra.mrb[0].mxu1 %vm230_vm0, %v217_v8  ;;  %v219_v11 = vld [vmem:[%s211_s15 + $0x38] sm:$0xff]  ;;  %v226_v14 = vld [vmem:[%s944_s16 + $0x28] sm:$0xff]  ;;  %v225_v16 = vld [vmem:[%s944_s16 + $0x20] sm:$0xff]  ;;  %s502_s12 = scalar_lea.sflag (%p205_p12), [#allocation5], %s167_s23  ;;  %s734_s3 = scalar_lea.vmem (%p205_p12), %s992_s25, 128 }
  0x20   : >> { %652 = vmatprep.mubr.msk.f32.mxu1 %vm230_vm0, %v218_v9  ;;  %v224_v22 = vld [vmem:[%s944_s16 + $0x18] sm:$0xff]  ;;  %v223_v25 = vld [vmem:[%s944_s16 + $0x10] sm:$0xff]  ;;  %p735_p13 = scmp.ne.s32.totalorder (%p205_p12), %s992_s25, %s734_s3  ;;  %s832_s4 = smov (%p205_p12), [#allocation4]  }
  0x21   : >> { %v228_v27 = vld [vmem:[%s944_s16 + $0x38] sm:$0xff]  ;;  %v227_v29 = vld [vmem:[%s944_s16 + $0x30] sm:$0xff]  ;;  %s738_s5 = sshll.u32 (%p205_p12), %s832_s4, 4  ;;  %s739_s5 = int_to_ptr.vmem [resolvable:$false] %s738_s5 }
  0x22   : >> { %647 = vmatmul.mubr.msk.f32.gmra.mrb[2].mxu0 %vm230_vm0, %v215_v10  ;;  %p736_p0 = pnand (%p205_p12), %p735_p13, %p888_p4  ;;  %s740_s7 = scalar_lea.vmem (%p205_p12), %s739_s5, 256 }
  0x23   : >> { %653 = vmatmul.mubr.msk.f32.gmra.mrb[2].mxu1 %vm230_vm0, %v219_v11  ;;  %p741_p2 = scmp.lt.s32.totalorder (%p205_p12), %s992_s25, %s739_s5  ;;  %p742_p3 = scmp.lt.s32.totalorder (%p205_p12), %s740_s7, %s734_s3 }
  0x24   : > { %p737_p1 = pneg (%p205_p12), %p736_p0 }
  0x25   : > { %p743_p5 = por (%p205_p12), %p742_p3, %p741_p2 }
  0x27   : > { %p744_p6 = pnand (%p205_p12), %p743_p5, %p737_p1 }
  0xf1   : >> { %v645_v15 = vpop.f32.mrb[0].mxu0 }
  0xf2   : >> { %v361_v17 = vmin.f32 %v222_v12, %v645_v15  ;;  %v321_v18 = vpop.f32.mrb[1].mxu0  ;;  %v651_v19 = vpop.f32.mrb[0].mxu1 }
  0xf3   : >> { %v360_v20 = vmin.f32 %v221_v13, %v321_v18  ;;  %v368_v21 = vmin.f32 %v321_v18, %v645_v15  ;;  %v365_v23 = vmin.f32 %v226_v14, %v651_v19  ;;  %v341_v24 = vpop.f32.mrb[1].mxu1 }
  0xf4   : >> { %377 = vst [vmem:[%s944_s16 + $0x8] sm:$0xff] %v361_v17  ;;  %v364_v26 = vmin.f32 %v225_v16, %v341_v24 }
  0xf5   : >> { %376 = vst [vmem:[%s944_s16] sm:$0xff] %v360_v20  ;;  %v648_v28 = vpop.f32.mrb[2].mxu0  ;;  %381 = vst [vmem:[%s944_s16 + $0x28] sm:$0xff] %v365_v23 }
  0xf6   : >> { %v363_v30 = vmin.f32 %v224_v22, %v648_v28  ;;  %v331_v31 = vpop.f32.mrb[3].mxu0  ;;  %380 = vst [vmem:[%s944_s16 + $0x20] sm:$0xff] %v364_v26  ;;  %v654_v32 = vpop.f32.mrb[2].mxu1 }
  0xf7   : >> { %v362_v33 = vmin.f32 %v223_v25, %v331_v31  ;;  %v369_v34 = vmin.f32 %v368_v21, %v331_v31  ;;  %v367_v35 = vmin.f32 %v228_v27, %v654_v32  ;;  %v351_v36 = vpop.f32.mrb[3].mxu1 }
  0xf8   : >> { %379 = vst [vmem:[%s944_s16 + $0x18] sm:$0xff] %v363_v30  ;;  %v366_v37 = vmin.f32 %v227_v29, %v351_v36 }
  0xf9   : >> { %v370_v38 = vmin.f32 %v369_v34, %v648_v28  ;;  %378 = vst [vmem:[%s944_s16 + $0x10] sm:$0xff] %v362_v33  ;;  %383 = vst [vmem:[%s944_s16 + $0x38] sm:$0xff] %v367_v35 }
  0xfa   : >> { %382 = vst [vmem:[%s944_s16 + $0x30] sm:$0xff] %v366_v37 }
  0xfb   : >> { %v371_v39 = vmin.f32 %v370_v38, %v341_v24 }
  0xfd   : >> { %v372_v40 = vmin.f32 %v371_v39, %v651_v19 }
  0xff   : >> { %v373_v41 = vmin.f32 %v372_v40, %v351_v36  ;;  %207 = sbr.rel (!%p205_p12) target bundleno = 26 (0x1a), region = 83 }
 0x101   : >> { %v374_v42 = vmin.f32 %v373_v41, %v654_v32  ;;  %v397_v44 = vld [vmem:[#allocation2] sm:$0xff] (%p205_p12)  ;;  %v399_v45 = vld [vmem:[#allocation2 + $0x10] sm:$0xff] (%p205_p12)  ;;  %v398_v46 = vld [vmem:[#allocation2 + $0x8] sm:$0xff] (%p205_p12) }
 0x102   : > { %413 = vmin.xlane.f32.xlu0 (%p205_p12), %v397_v44  ;;  %417 = vmin.xlane.f32.xlu1 (%p205_p12), %v399_v45  ;;  %v400_v47 = vld [vmem:[#allocation2 + $0x18] sm:$0xff] (%p205_p12)  ;;  %v401_v48 = vld [vmem:[#allocation2 + $0x20] sm:$0xff] (%p205_p12)  ;;  %v402_v49 = vld [vmem:[#allocation2 + $0x28] sm:$0xff] (%p205_p12) }
 0x103   : >> { %v375_v43 = vmin.f32 %v824_v2, %v374_v42   ;;  %v403_v50 = vld [vmem:[#allocation2 + $0x30] sm:$0xff] (%p205_p12)  ;;  %v404_v51 = vld [vmem:[#allocation2 + $0x38] sm:$0xff] (%p205_p12)  ;;  %v405_v52 = vld [vmem:[#allocation2 + $0x40] sm:$0xff] (%p205_p12) }
 0x104   : > { %v406_v53 = vld [vmem:[#allocation2 + $0x48] sm:$0xff] (%p205_p12)  ;;  %v407_v54 = vld [vmem:[#allocation2 + $0x50] sm:$0xff] (%p205_p12)  ;;  %v408_v55 = vld [vmem:[#allocation2 + $0x58] sm:$0xff] (%p205_p12) }
 0x105   : >> { %v1046_v2 = vmov %v375_v43  ;;  %v384_v56 = vrot.slane (%p205_p12), %v375_v43, 4  ;;  %v409_v57 = vld [vmem:[#allocation2 + $0x60] sm:$0xff] (%p205_p12)  ;;  %v410_v58 = vld [vmem:[#allocation2 + $0x68] sm:$0xff] (%p205_p12)  ;;  %v411_v61 = vld [vmem:[#allocation2 + $0x70] sm:$0xff] (%p205_p12) }
 0x106   : > { %415 = vmin.xlane.f32.xlu0 %v398_v46  ;;  %419 = vmin.xlane.f32.xlu1 %v400_v47  ;;  %v412_v62 = vld [vmem:[#allocation2 + $0x78] sm:$0xff]  ;;  %v391_v2 = vld [vmem:[#allocation3] sm:$0x1] }
 0x107   : > { %v385_v59 = vmin.f32 %v375_v43, %v384_v56 }
 0x109   : > { %v386_v60 = vrot.slane %v385_v59, 2 }
 0x10a   : > { %421 = vmin.xlane.f32.xlu0 %v401_v48  ;;  %423 = vmin.xlane.f32.xlu1 %v402_v49 }
 0x10b   : > { %v387_v63 = vmin.f32 %v385_v59, %v386_v60 }
 0x10d   : > { %v388_v0 = vrot.slane %v387_v63, 1 }
 0x10e   : > { %425 = vmin.xlane.f32.xlu0 %v403_v50  ;;  %427 = vmin.xlane.f32.xlu1 %v404_v51 }
 0x10f   : > { %v389_v1 = vmin.f32 %v387_v63, %v388_v0 }
 0x111   : > { %v392_v3 = vadd.f32 %v391_v2, %v389_v1 }
 0x112   : > { %429 = vmin.xlane.f32.xlu0 %v405_v52  ;;  %431 = vmin.xlane.f32.xlu1 %v406_v53 }
 0x113   : > { %393 = vst [vmem:[#allocation3] sm:$0x1] %v392_v3 }
 0x116   : > { %433 = vmin.xlane.f32.xlu0 %v407_v54  ;;  %435 = vmin.xlane.f32.xlu1 %v408_v55 }
 0x11a   : > { %437 = vmin.xlane.f32.xlu0 %v409_v57  ;;  %439 = vmin.xlane.f32.xlu1 %v410_v58  ;;  %v486_v4 = vld [vmem:[#allocation3] sm:$0x1] }
 0x11b   : > { %v488_v5 = vsel %vm487_vm1, %v486_v4, 0.0 }
 0x11e   : > { %441 = vmin.xlane.f32.xlu0 %v411_v61  ;;  %443 = vmin.xlane.f32.xlu1 %v412_v62 }
 0x122   : > { %489 = vadd.xlane.f32.xlu1 %v488_v5 }
 0x18f   : > { %v414_v6 = vpop.xlane.xlu0 %413  ;;  %v418_v7 = vpop.xlane.xlu1 %417 }
 0x190   : > { %v446_v10 = vsel %vm445_vm2, %v414_v6, 0.0  ;;  %v449_v13 = vsel %vm445_vm2, %v418_v7, 0.0 }
 0x193   : > { %v416_v8 = vpop.xlane.xlu0 %415  ;;  %v420_v9 = vpop.xlane.xlu1 %419 }
 0x194   : > { %v447_v11 = vsel %vm445_vm2, %v416_v8, 0.0  ;;  %v451_v14 = vsel %vm445_vm2, %v420_v9, 0.0 }
 0x195   : > { %v448_v12 = vadd.f32 %v447_v11, %v446_v10 }
 0x197   : > { %v450_v15 = vadd.f32 %v449_v13, %v448_v12  ;;  %v422_v16 = vpop.xlane.xlu0 %421  ;;  %v424_v17 = vpop.xlane.xlu1 %423 }
 0x198   : > { %v453_v18 = vsel %vm445_vm2, %v422_v16, 0.0  ;;  %v455_v20 = vsel %vm445_vm2, %v424_v17, 0.0 }
 0x199   : > { %v452_v19 = vadd.f32 %v451_v14, %v450_v15 }
 0x19b   : > { %v454_v21 = vadd.f32 %v453_v18, %v452_v19  ;;  %v426_v22 = vpop.xlane.xlu0 %425  ;;  %v428_v23 = vpop.xlane.xlu1 %427 }
 0x19c   : > { %v457_v24 = vsel %vm445_vm2, %v426_v22, 0.0  ;;  %v459_v26 = vsel %vm445_vm2, %v428_v23, 0.0 }
 0x19d   : > { %v456_v25 = vadd.f32 %v455_v20, %v454_v21 }
 0x19f   : > { %v458_v27 = vadd.f32 %v457_v24, %v456_v25  ;;  %v430_v28 = vpop.xlane.xlu0 %429  ;;  %v432_v29 = vpop.xlane.xlu1 %431 }
 0x1a0   : > { %v461_v30 = vsel %vm445_vm2, %v430_v28, 0.0  ;;  %v463_v32 = vsel %vm445_vm2, %v432_v29, 0.0 }
 0x1a1   : > { %v460_v31 = vadd.f32 %v459_v26, %v458_v27 }
 0x1a3   : > { %v462_v33 = vadd.f32 %v461_v30, %v460_v31  ;;  %v434_v34 = vpop.xlane.xlu0 %433  ;;  %v436_v35 = vpop.xlane.xlu1 %435 }
 0x1a4   : > { %v465_v36 = vsel %vm445_vm2, %v434_v34, 0.0  ;;  %v467_v38 = vsel %vm445_vm2, %v436_v35, 0.0 }
 0x1a5   : > { %v464_v37 = vadd.f32 %v463_v32, %v462_v33 }
 0x1a7   : > { %v466_v39 = vadd.f32 %v465_v36, %v464_v37  ;;  %v438_v40 = vpop.xlane.xlu0 %437  ;;  %v440_v41 = vpop.xlane.xlu1 %439 }
 0x1a8   : > { %v469_v42 = vsel %vm445_vm2, %v438_v40, 0.0  ;;  %v471_v44 = vsel %vm445_vm2, %v440_v41, 0.0 }
 0x1a9   : > { %v468_v43 = vadd.f32 %v467_v38, %v466_v39 }
 0x1ab   : > { %v470_v45 = vadd.f32 %v469_v42, %v468_v43  ;;  %v442_v46 = vpop.xlane.xlu0 %441  ;;  %v444_v47 = vpop.xlane.xlu1 %443 }
 0x1ac   : > { %v473_v48 = vsel %vm445_vm2, %v442_v46, 0.0  ;;  %v475_v50 = vsel %vm445_vm2, %v444_v47, 0.0 }
 0x1ad   : > { %v472_v49 = vadd.f32 %v471_v44, %v470_v45 }
 0x1af   : > { %v474_v51 = vadd.f32 %v473_v48, %v472_v49  ;;  %v490_v53 = vpop.xlane.xlu1 %489 }
 0x1b0   : > { %v491_v54 = vrot.slane %v490_v53, 4 }
 0x1b1   : > { %v476_v52 = vadd.f32 %v475_v50, %v474_v51 }
 0x1b2   : > { %v492_v55 = vadd.f32 %v491_v54, %v490_v53 }
 0x1b3   : > { %477 = vadd.xlane.f32.xlu0 %v476_v52 }
 0x1b4   : > { %v493_v56 = vrot.slane %v492_v55, 2 }
 0x1b6   : > { %v494_v60 = vadd.f32 %v493_v56, %v492_v55 }
 0x1b8   : > { %v495_v63 = vrot.slane %v494_v60, 1 }
 0x1ba   : > { %v496_v2 = vadd.f32 %v495_v63, %v494_v60 }
 0x240   : > { %v478_v57 = vpop.xlane.xlu0 %477 }
 0x241   : > { %v479_v58 = vrot.slane %v478_v57, 4 }
 0x243   : > { %v480_v59 = vadd.f32 %v479_v58, %v478_v57 }
 0x245   : > { %v481_v61 = vrot.slane %v480_v59, 2 }
 0x247   : > { %v482_v62 = vadd.f32 %v481_v61, %v480_v59 }
 0x249   : > { %v483_v0 = vrot.slane %v482_v62, 1 }
 0x24b   : > { %v484_v1 = vadd.f32 %v483_v0, %v482_v62 }
 0x24d   : > { %657 = vpush %v484_v1 }
 0x24e   : > { %659 = vpush %v496_v2 }
 0x27e   : > { %s658_s20 = spop %657 }
 0x27f   : > { %s660_s26 = spop %659 }
 0x280   : > { %s498_s27 = sadd.f32 %s660_s26, %s658_s20 }
 0x282   : > { %v499_v3 = vstv %s498_s27 }
 0x283   : > { %500 = vst [vmem:[%s169_s6] sm:$0xff] %v499_v3 }
 0x284   : > { %747 = shalt.err (!%p744_p6)
}
 0x285   : > { %s748_s23 = scalar_lea.hbm %s990_s30, 128  ;;  %s752_s8 = scalar_lea.hbm %s1043_s2, 256 }
 0x286   : > { %p749_p7 = scmp.ne.s32.totalorder %s990_s30, %s748_s23  ;;  %p753_p11 = scmp.lt.u32.totalorder %s990_s30, %s1043_s2 }
 0x287   : > { %p754_p12 = scmp.lt.u32.totalorder %s752_s8, %s748_s23  ;;  %p756_p0 = scmp.lt.u32.totalorder %s748_s23, %s990_s30 }
 0x288   : > { %p750_p9 = pnand %p749_p7, %p888_p4 }
 0x289   : > { %p755_p13 = por %p754_p12, %p753_p11 }
 0x28a   : > { %p751_p10 = pneg %p750_p9 }
 0x28b   : > { %p757_p1 = por %p756_p0, %p755_p13 }
 0x28d   : > { %p758_p2 = pnand %p757_p1, %p751_p10 }
 0x28f   : > { %761 = shalt.err (!%p758_p2)
}
 0x290   : > { %661 = dma.vmem_to_hbm [thread:$0]  (%p888_p4), %s992_s25, 128, %s990_s30, %s502_s12  }
 0x291 PF: > { %p667_p3 = scmp.ge.s32.totalorder %s820_s14, 2  ;;  %s527_s18 = sand.u32 1, %s800_s9  }
 0x292   : > { %s528_s20 = scalar_lea.sflag [#allocation5], %s527_s18 }
 0x293   : > { %p664_p5 = pnand %p667_p3, %p895_p8 }
 0x295   : > { %795 = dma.done.wait (!%p664_p5), %s528_s20, 128  }
 0x296   : > { %797 = vsyncadd (!%p664_p5), %s528_s20, 4294967168  ;;  %s15_s14 = sadd.s32 1, %s820_s14   ;;  %s1047_s9 = smov %s804_s10 }
 0x297   : > { %p12_p6 = scmp.ge.s32.totalorder %s15_s14, 4   ;;  %s1048_s10 = smov %s808_s11 }
 0x298   : > { %s1049_s11 = smov %s901_s22  ;;  %s1050_s12 = smov %s816_s13 }
 0x299   : > { %s1051_s13 = smov %s1053_s17  ;;  %14 = sbr.rel (!%p12_p6) target bundleno = 4 (0x4), region = 94 }
 0x2a0   :  { %533 = vsyncpa [#allocation5], 1 }
 0x2a1   :  { %535 = vsyncpa [#allocation5 + $0x1], 1 }

</bundles_post_ra>
